<compile_context>
chip_gen: v7x
topology: tpu7x:2x2x1
jax: 0.10.0
libtpu: 0.0.40
codegen_flags: <defaults>
</compile_context>

<pallas_src>
import functools
import math

import jax
import jax.numpy as jnp
from jax import lax
from jax.experimental import pallas as pl
from jax.experimental.pallas import tpu as pltpu


def _round_up(x: int, m: int) -> int:
    return ((x + m - 1) // m) * m


def _attn_pool_kernel(x_ref, pos_ref, wq_ref, bq_ref, wk_ref, bk_ref,
                      wv_ref, bv_ref, wc_ref, bc_ref, o_ref, seq_ref,
                      *, num_heads: int, head_dim: int, block_b: int,
                      seq_len: int, seq_len_pad: int):
    """One grid step: `block_b` batch elements, full attention pool.

    x_ref:   (block_b, C, HW)      input tile (compute dtype)
    pos_ref: (L, C)                positional embedding (compute dtype)
    w*_ref:  (C, C) / (C, O_pad)   pre-transposed weights (compute dtype)
    b*_ref:  (1, C) / (1, O_pad)   biases (f32; attention scale folded into bq)
    o_ref:   (L, block_b, O_pad)   seq-major output block (f32)
    seq_ref: (block_b, L_pad, C)   VMEM scratch, sublane-aligned token stride
    """
    B, L, Lp = block_b, seq_len, seq_len_pad
    cdt = wq_ref.dtype
    C = wq_ref.shape[0]
    Opad = wc_ref.shape[1]

    # ---- build the padded (B, L_pad, C) token matrix ------------------------
    x = x_ref[...]                                          # (B, C, HW) cdt
    mean_c = jnp.mean(x.astype(jnp.float32), axis=2)        # (B, C), lane reduce, f32 acc
    xt = jnp.transpose(x, (0, 2, 1))                        # (B, HW, C) batched XLU transpose

    pos_head = pos_ref[0:1, :]                              # (1, C)  cdt
    pos_tail = pos_ref[1:, :]                               # (HW, C) cdt

    seq_ref[:, 0:1, :] = (mean_c[:, None, :]
                          + pos_head[None].astype(jnp.float32)).astype(cdt)
    seq_ref[:, 1:L, :] = xt + pos_tail[None]
    if Lp > L:
        # keep pad rows finite (they are masked out of the softmax below)
        seq_ref[:, L:, :] = jnp.zeros((B, Lp - L, C), dtype=cdt)

    seq2 = seq_ref[...].reshape(B * Lp, C)                  # aligned -> free reshape

    # ---- fused q/k/v projections over all B*L_pad rows (scale folded) -------
    q = jnp.dot(seq2, wq_ref[...], preferred_element_type=jnp.float32) + bq_ref[...]
    k = jnp.dot(seq2, wk_ref[...], preferred_element_type=jnp.float32) + bk_ref[...]
    v = jnp.dot(seq2, wv_ref[...], preferred_element_type=jnp.float32) + bv_ref[...]
    q3 = q.astype(cdt).reshape(B, Lp, C)
    k3 = k.astype(cdt).reshape(B, Lp, C)
    v3 = v.astype(cdt).reshape(B, Lp, C)

    if Lp > L:
        kmask = lax.broadcasted_iota(jnp.int32, (1, 1, Lp), 2) < L

    # ---- per-head attention, batched over the block_b batch elements --------
    head_outs = []
    for h in range(num_heads):
        lo = h * head_dim
        hi = lo + head_dim
        qh = q3[:, :, lo:hi]                                # (B, Lp, hd)
        kh = k3[:, :, lo:hi]
        vh = v3[:, :, lo:hi]
        s = jnp.einsum('bqd,bkd->bqk', qh, kh,
                       preferred_element_type=jnp.float32)  # (B, Lp, Lp)
        if Lp > L:
            s = jnp.where(kmask, s, -1e30)                  # mask padded keys
        s = s - jnp.max(s, axis=-1, keepdims=True)
        p = jnp.exp(s)
        p = p * pl.reciprocal(jnp.sum(p, axis=-1, keepdims=True), approx=True)
        head_outs.append(
            jnp.einsum('bqk,bkd->bqd', p.astype(cdt), vh,
                       preferred_element_type=jnp.float32))  # (B, Lp, hd)
    attn = jnp.concatenate(head_outs, axis=-1).astype(cdt)   # (B, Lp, C)

    # ---- fused output projection + one-shot seq-major store -----------------
    out = jnp.dot(attn.reshape(B * Lp, C), wc_ref[...],
                  preferred_element_type=jnp.float32) + bc_ref[...]   # (B*Lp, Opad)
    out = out.reshape(B, Lp, Opad)
    o_ref[...] = jnp.transpose(out, (1, 0, 2))[:L].astype(o_ref.dtype)


def prepare_params(params, *, num_heads: int, compute_dtype=jnp.bfloat16,
                   pad_output_to: int = 128):
    """One-time param prep: transpose weights, fold 1/sqrt(head_dim) into
    q_proj, pad output_dim to a full lane tile, cast matmul operands."""
    C = params["wq"].shape[0]
    O = params["wc"].shape[0]
    head_dim = C // num_heads
    scale = 1.0 / math.sqrt(head_dim)

    O_pad = _round_up(O, pad_output_to) if pad_output_to else O
    wc = params["wc"].T                                     # (C, O)
    bc = params["bc"].reshape(1, O)
    if O_pad != O:
        wc = jnp.pad(wc, ((0, 0), (0, O_pad - O)))
        bc = jnp.pad(bc, ((0, 0), (0, O_pad - O)))

    f32 = jnp.float32
    return {
        "pos": params["pos"].astype(compute_dtype),
        "wq": (params["wq"].T * scale).astype(compute_dtype),
        "bq": (params["bq"] * scale).reshape(1, C).astype(f32),
        "wk": params["wk"].T.astype(compute_dtype),
        "bk": params["bk"].reshape(1, C).astype(f32),
        "wv": params["wv"].T.astype(compute_dtype),
        "bv": params["bv"].reshape(1, C).astype(f32),
        "wc": wc.astype(compute_dtype),
        "bc": bc.astype(f32),
        "o_dim": O,
    }


def _choose_block_b(n: int) -> int:
    # block_b sits on the sublane axis of the (L, block_b, O) output block, so
    # it must be a multiple of 8 or span the whole batch.  Prefer >=2 grid
    # steps so the 'parallel' axis can shard across v7x's two TensorCores.
    if n % 8 != 0:
        return n  # TODO(synk): pad ragged batches to a multiple of 8 for large N.
    for cand in (16, 8):
        if n % cand == 0 and n // cand >= 2:
            return cand
    return n


def _const_spec(shape):
    """BlockSpec for grid-constant operands (weights / biases / pos)."""
    ndim = len(shape)
    index_map = lambda b: (0,) * ndim
    try:
        # Constant index map => the second pipeline buffer is pure VMEM waste.
        return pl.BlockSpec(shape, index_map, pipeline_mode=pl.Buffered(1))
    except Exception:
        # Only the BlockSpec *construction* is guarded (older JAX without
        # pipeline_mode); genuine compile errors still propagate.
        return pl.BlockSpec(shape, index_map)


def attention_pool_2d(x_nchw, prepped, *, num_heads: int, block_b=None):
    """x_nchw: (N, C, H, W).  Returns (L, N, output_dim), L = H*W + 1."""
    N, C, H, W = x_nchw.shape
    HW = H * W
    L = HW + 1
    assert C % num_heads == 0
    head_dim = C // num_heads
    cdt = jnp.dtype(prepped["wq"].dtype)
    O_pad = prepped["wc"].shape[1]
    O = prepped["o_dim"]
    assert prepped["pos"].shape == (L, C), (prepped["pos"].shape, (L, C))

    if block_b is None:
        block_b = _choose_block_b(N)
    assert N % block_b == 0, (N, block_b)

    pack = 16 if cdt.itemsize == 2 else 8          # sublane packing of cdt
    L_pad = _round_up(L, pack)

    # Only flatten + cast -- no HBM transpose; the kernel transposes in VMEM.
    x3 = x_nchw.reshape(N, C, HW).astype(cdt)

    kernel = functools.partial(
        _attn_pool_kernel, num_heads=num_heads, head_dim=head_dim,
        block_b=block_b, seq_len=L, seq_len_pad=L_pad)

    # Rough per-step VMEM estimate -> explicit limit, kept under v7x's 64 MiB.
    itm = cdt.itemsize
    est = (2 * (3 * C * C + C * O_pad) * itm          # weights (2x headroom)
           + 2 * block_b * C * HW * itm               # x block, double-buffered
           + 2 * L * block_b * O_pad * 4              # out block, double-buffered
           + block_b * L_pad * C * itm                # seq scratch
           + 6 * block_b * L_pad * max(C, O_pad) * 4) # q/k/v/attn/out temporaries
    vmem_limit = int(min(56 * 2**20, max(2 * est, 8 * 2**20)))
    # TODO(synk): at production C (~2048) on v7x, tile the projections along the
    # output-feature axis (extra 'arbitrary' grid dim) or keep wc in HBM
    # (memory_space=pl.ANY + manual async copy) instead of raising the limit.

    out_full = pl.pallas_call(
        kernel,
        out_shape=jax.ShapeDtypeStruct((L, N, O_pad), jnp.float32),
        grid=(N // block_b,),
        in_specs=[
            pl.BlockSpec((block_b, C, HW), lambda b: (b, 0, 0)),  # x per step
            _const_spec((L, C)),                       # positional embedding
            _const_spec((C, C)), _const_spec((1, C)),  # q_proj
            _const_spec((C, C)), _const_spec((1, C)),  # k_proj
            _const_spec((C, C)), _const_spec((1, C)),  # v_proj
            _const_spec((C, O_pad)), _const_spec((1, O_pad)),     # c_proj
        ],
        out_specs=pl.BlockSpec((L, block_b, O_pad), lambda b: (0, b, 0)),
        scratch_shapes=[pltpu.VMEM((block_b, L_pad, C), cdt)],
        compiler_params=pltpu.CompilerParams(
            dimension_semantics=("parallel",),
            vmem_limit_bytes=vmem_limit),
    )(x3, prepped["pos"],
      prepped["wq"], prepped["bq"], prepped["wk"], prepped["bk"],
      prepped["wv"], prepped["bv"], prepped["wc"], prepped["bc"])

    if O_pad != O:
        return out_full[:, :, :O]
    return out_full


def _reference(x_nchw, params, *, num_heads: int):
    """Pure-JAX reference replicating F.multi_head_attention_forward."""
    N, C, H, W = x_nchw.shape
    head_dim = C // num_heads
    x = x_nchw.reshape(N, C, H * W).transpose(2, 0, 1)               # (HW, N, C)
    x = jnp.concatenate([x.mean(axis=0, keepdims=True), x], axis=0)   # (L, N, C)
    x = x + params["pos"][:, None, :]
    q = x @ params["wq"].T + params["bq"]
    k = x @ params["wk"].T + params["bk"]
    v = x @ params["wv"].T + params["bv"]
    L = x.shape[0]

    def split(t):  # (L, N, C) -> (N, Hh, L, hd)
        return t.reshape(L, N, num_heads, head_dim).transpose(1, 2, 0, 3)

    qh, kh, vh = split(q), split(k), split(v)
    s = jnp.einsum("nhqd,nhkd->nhqk", qh * (1.0 / math.sqrt(head_dim)), kh)
    p = jax.nn.softmax(s, axis=-1)
    o = jnp.einsum("nhqk,nhkd->nhqd", p, vh)
    o = o.transpose(2, 0, 1, 3).reshape(L, N, C)
    return o @ params["wc"].T + params["bc"]


if __name__ == "__main__":
    # spacial_dim=16 => H=W=4 (HW=16), embed_dim=32, num_heads=4, output_dim=16.
    N, C, H, W = 2, 32, 4, 4
    num_heads = 4
    output_dim = 16
    L = H * W + 1

    key = jax.random.PRNGKey(0)
    keys = jax.random.split(key, 10)
    params = {
        "pos": jax.random.normal(keys[0], (L, C), jnp.float32) / math.sqrt(C),
        "wq": jax.random.normal(keys[1], (C, C), jnp.float32) * 0.05,
        "bq": jax.random.normal(keys[2], (C,), jnp.float32) * 0.05,
        "wk": jax.random.normal(keys[3], (C, C), jnp.float32) * 0.05,
        "bk": jax.random.normal(keys[4], (C,), jnp.float32) * 0.05,
        "wv": jax.random.normal(keys[5], (C, C), jnp.float32) * 0.05,
        "bv": jax.random.normal(keys[6], (C,), jnp.float32) * 0.05,
        "wc": jax.random.normal(keys[7], (output_dim, C), jnp.float32) * 0.05,
        "bc": jax.random.normal(keys[8], (output_dim,), jnp.float32) * 0.05,
    }
    x = jax.random.normal(keys[9], (N, C, H, W), jnp.float32)

    ref = _reference(x, params, num_heads=num_heads)

    # Primary (performance) config: bf16 matmul operands, f32 accumulation.
    prepped_bf16 = prepare_params(params, num_heads=num_heads,
                                  compute_dtype=jnp.bfloat16)
    out = jax.block_until_ready(
        attention_pool_2d(x, prepped_bf16, num_heads=num_heads))
    assert out.shape == (L, N, output_dim), out.shape
    assert jnp.allclose(out, ref, atol=5e-2, rtol=5e-2), \
        float(jnp.abs(out - ref).max())

    # Full-f32 compute path for a tighter check of the padding/masking logic.
    prepped_f32 = prepare_params(params, num_heads=num_heads,
                                 compute_dtype=jnp.float32)
    out_f32 = jax.block_until_ready(
        attention_pool_2d(x, prepped_f32, num_heads=num_heads))
    assert out_f32.shape == (L, N, output_dim), out_f32.shape
    assert jnp.allclose(out_f32, ref, atol=2e-2, rtol=2e-2), \
        float(jnp.abs(out_f32 - ref).max())

    print("KERNEL_OK")
</pallas_src>

<mosaic_0001>
module attributes {stable_mosaic.version = 11 : i64} {
  func.func @_attn_pool_kernel(%arg0: i32, %arg1: memref<2x32x16xbf16, #tpu.memory_space<vmem>>, %arg2: memref<17x32xbf16, #tpu.memory_space<vmem>>, %arg3: memref<32x32xbf16, #tpu.memory_space<vmem>>, %arg4: memref<1x32xf32, #tpu.memory_space<vmem>>, %arg5: memref<32x32xbf16, #tpu.memory_space<vmem>>, %arg6: memref<1x32xf32, #tpu.memory_space<vmem>>, %arg7: memref<32x32xbf16, #tpu.memory_space<vmem>>, %arg8: memref<1x32xf32, #tpu.memory_space<vmem>>, %arg9: memref<32x128xbf16, #tpu.memory_space<vmem>>, %arg10: memref<1x128xf32, #tpu.memory_space<vmem>>, %arg11: memref<17x2x128xf32, #tpu.memory_space<vmem>>, %arg12: memref<2x32x32xbf16, #tpu.memory_space<vmem>>) attributes {dimension_semantics = [#tpu.dimension_semantics<parallel>], iteration_bounds = array<i64: 1>, scalar_prefetch = 0 : i64, scratch_operands = 1 : i64, tpu.core_type = #tpu.core_type<tc>, window_params = [{transform_indices = @transform_0, window_bounds = array<i64: 2, 32, 16>}, {pipeline_mode = #tpu.pipeline_mode<synchronous>, transform_indices = @transform_1, window_bounds = array<i64: 17, 32>}, {pipeline_mode = #tpu.pipeline_mode<synchronous>, transform_indices = @transform_2, window_bounds = array<i64: 32, 32>}, {pipeline_mode = #tpu.pipeline_mode<synchronous>, transform_indices = @transform_3, window_bounds = array<i64: 1, 32>}, {pipeline_mode = #tpu.pipeline_mode<synchronous>, transform_indices = @transform_4, window_bounds = array<i64: 32, 32>}, {pipeline_mode = #tpu.pipeline_mode<synchronous>, transform_indices = @transform_5, window_bounds = array<i64: 1, 32>}, {pipeline_mode = #tpu.pipeline_mode<synchronous>, transform_indices = @transform_6, window_bounds = array<i64: 32, 32>}, {pipeline_mode = #tpu.pipeline_mode<synchronous>, transform_indices = @transform_7, window_bounds = array<i64: 1, 32>}, {pipeline_mode = #tpu.pipeline_mode<synchronous>, transform_indices = @transform_8, window_bounds = array<i64: 32, 128>}, {pipeline_mode = #tpu.pipeline_mode<synchronous>, transform_indices = @transform_9, window_bounds = array<i64: 1, 128>}, {transform_indices = @transform_10, window_bounds = array<i64: 17, 2, 128>}]} {
    %c0 = arith.constant 0 : index
    %c0_0 = arith.constant 0 : index
    %c0_1 = arith.constant 0 : index
    %0 = vector.load %arg1[%c0, %c0_0, %c0_1] : memref<2x32x16xbf16, #tpu.memory_space<vmem>>, vector<2x32x16xbf16>
    %1 = arith.extf %0 : vector<2x32x16xbf16> to vector<2x32x16xf32>
    %cst = arith.constant dense<0.000000e+00> : vector<2x32xf32>
    %2 = vector.multi_reduction <add>, %1, %cst [2] : vector<2x32x16xf32> to vector<2x32xf32>
    %cst_2 = arith.constant 1.600000e+01 : f32
    %3 = vector.broadcast %cst_2 : f32 to vector<2x32xf32>
    %4 = arith.divf %2, %3 : vector<2x32xf32>
    %5 = tpu.transpose %0, [0, 2, 1] : vector<2x32x16xbf16> -> vector<2x16x32xbf16>
    %c0_3 = arith.constant 0 : index
    %c0_4 = arith.constant 0 : index
    %6 = vector.load %arg2[%c0_3, %c0_4] : memref<17x32xbf16, #tpu.memory_space<vmem>>, vector<1x32xbf16>
    %c1 = arith.constant 1 : index
    %c0_5 = arith.constant 0 : index
    %7 = vector.load %arg2[%c1, %c0_5] : memref<17x32xbf16, #tpu.memory_space<vmem>>, vector<16x32xbf16>
    %8 = vector.shape_cast %4 : vector<2x32xf32> to vector<2x1x32xf32>
    %9 = vector.shape_cast %6 : vector<1x32xbf16> to vector<1x1x32xbf16>
    %10 = arith.extf %9 : vector<1x1x32xbf16> to vector<1x1x32xf32>
    %11 = vector.broadcast %10 : vector<1x1x32xf32> to vector<2x1x32xf32>
    %12 = arith.addf %8, %11 : vector<2x1x32xf32>
    %13 = arith.truncf %12 : vector<2x1x32xf32> to vector<2x1x32xbf16>
    %c0_6 = arith.constant 0 : index
    %c0_7 = arith.constant 0 : index
    %c0_8 = arith.constant 0 : index
    %14 = vector.load %arg12[%c0_6, %c0_7, %c0_8] : memref<2x32x32xbf16, #tpu.memory_space<vmem>>, vector<2x1x32xbf16>
    tpu.vector_store %arg12[%c0_6, %c0_7, %c0_8], %13 {strides = array<i32>} : memref<2x32x32xbf16, #tpu.memory_space<vmem>>, vector<2x1x32xbf16>,
    %15 = vector.shape_cast %7 : vector<16x32xbf16> to vector<1x16x32xbf16>
    %16 = vector.broadcast %15 : vector<1x16x32xbf16> to vector<2x16x32xbf16>
    %17 = arith.addf %5, %16 : vector<2x16x32xbf16>
    %c0_9 = arith.constant 0 : index
    %c1_10 = arith.constant 1 : index
    %c0_11 = arith.constant 0 : index
    %18 = vector.load %arg12[%c0_9, %c1_10, %c0_11] : memref<2x32x32xbf16, #tpu.memory_space<vmem>>, vector<2x16x32xbf16>
    tpu.vector_store %arg12[%c0_9, %c1_10, %c0_11], %17 {strides = array<i32>} : memref<2x32x32xbf16, #tpu.memory_space<vmem>>, vector<2x16x32xbf16>,
    %cst_12 = arith.constant 0.000000e+00 : bf16
    %19 = vector.broadcast %cst_12 : bf16 to vector<2x15x32xbf16>
    %c0_13 = arith.constant 0 : index
    %c17 = arith.constant 17 : index
    %c0_14 = arith.constant 0 : index
    %20 = vector.load %arg12[%c0_13, %c17, %c0_14] : memref<2x32x32xbf16, #tpu.memory_space<vmem>>, vector<2x15x32xbf16>
    tpu.vector_store %arg12[%c0_13, %c17, %c0_14], %19 {strides = array<i32>} : memref<2x32x32xbf16, #tpu.memory_space<vmem>>, vector<2x15x32xbf16>,
    %c0_15 = arith.constant 0 : index
    %c0_16 = arith.constant 0 : index
    %c0_17 = arith.constant 0 : index
    %21 = vector.load %arg12[%c0_15, %c0_16, %c0_17] : memref<2x32x32xbf16, #tpu.memory_space<vmem>>, vector<2x32x32xbf16>
    %22 = vector.shape_cast %21 : vector<2x32x32xbf16> to vector<64x32xbf16>
    %c0_18 = arith.constant 0 : index
    %c0_19 = arith.constant 0 : index
    %23 = vector.load %arg3[%c0_18, %c0_19] : memref<32x32xbf16, #tpu.memory_space<vmem>>, vector<32x32xbf16>
    %cst_20 = arith.constant dense<0.000000e+00> : vector<64x32xf32>
    %24 = tpu.matmul %22, %23, %cst_20 {dimension_numbers = #tpu.dot_dimension_numbers<[1], [0], [0], [1], [0, 0, 1, 1], [], []>} : vector<64x32xbf16>, vector<32x32xbf16>, vector<64x32xf32> -> vector<64x32xf32>
    %c0_21 = arith.constant 0 : index
    %c0_22 = arith.constant 0 : index
    %25 = vector.load %arg4[%c0_21, %c0_22] : memref<1x32xf32, #tpu.memory_space<vmem>>, vector<1x32xf32>
    %26 = vector.broadcast %25 : vector<1x32xf32> to vector<64x32xf32>
    %27 = arith.addf %24, %26 : vector<64x32xf32>
    %c0_23 = arith.constant 0 : index
    %c0_24 = arith.constant 0 : index
    %28 = vector.load %arg5[%c0_23, %c0_24] : memref<32x32xbf16, #tpu.memory_space<vmem>>, vector<32x32xbf16>
    %cst_25 = arith.constant dense<0.000000e+00> : vector<64x32xf32>
    %29 = tpu.matmul %22, %28, %cst_25 {dimension_numbers = #tpu.dot_dimension_numbers<[1], [0], [0], [1], [0, 0, 1, 1], [], []>} : vector<64x32xbf16>, vector<32x32xbf16>, vector<64x32xf32> -> vector<64x32xf32>
    %c0_26 = arith.constant 0 : index
    %c0_27 = arith.constant 0 : index
    %30 = vector.load %arg6[%c0_26, %c0_27] : memref<1x32xf32, #tpu.memory_space<vmem>>, vector<1x32xf32>
    %31 = vector.broadcast %30 : vector<1x32xf32> to vector<64x32xf32>
    %32 = arith.addf %29, %31 : vector<64x32xf32>
    %c0_28 = arith.constant 0 : index
    %c0_29 = arith.constant 0 : index
    %33 = vector.load %arg7[%c0_28, %c0_29] : memref<32x32xbf16, #tpu.memory_space<vmem>>, vector<32x32xbf16>
    %cst_30 = arith.constant dense<0.000000e+00> : vector<64x32xf32>
    %34 = tpu.matmul %22, %33, %cst_30 {dimension_numbers = #tpu.dot_dimension_numbers<[1], [0], [0], [1], [0, 0, 1, 1], [], []>} : vector<64x32xbf16>, vector<32x32xbf16>, vector<64x32xf32> -> vector<64x32xf32>
    %c0_31 = arith.constant 0 : index
    %c0_32 = arith.constant 0 : index
    %35 = vector.load %arg8[%c0_31, %c0_32] : memref<1x32xf32, #tpu.memory_space<vmem>>, vector<1x32xf32>
    %36 = vector.broadcast %35 : vector<1x32xf32> to vector<64x32xf32>
    %37 = arith.addf %34, %36 : vector<64x32xf32>
    %38 = arith.truncf %27 : vector<64x32xf32> to vector<64x32xbf16>
    %39 = vector.shape_cast %38 : vector<64x32xbf16> to vector<2x32x32xbf16>
    %40 = arith.truncf %32 : vector<64x32xf32> to vector<64x32xbf16>
    %41 = vector.shape_cast %40 : vector<64x32xbf16> to vector<2x32x32xbf16>
    %42 = arith.truncf %37 : vector<64x32xf32> to vector<64x32xbf16>
    %43 = vector.shape_cast %42 : vector<64x32xbf16> to vector<2x32x32xbf16>
    %44 = tpu.iota {dimensions = array<i32: 2>} : vector<1x1x32xi32>
    %c17_i32 = arith.constant 17 : i32
    %45 = vector.broadcast %c17_i32 : i32 to vector<1x1x32xi32>
    %46 = arith.cmpi slt, %44, %45 : vector<1x1x32xi32>
    %47 = vector.extract_strided_slice %39 {offsets = [0, 0, 0], sizes = [2, 32, 8], strides = [1, 1, 1]} : vector<2x32x32xbf16> to vector<2x32x8xbf16>
    %48 = vector.extract_strided_slice %41 {offsets = [0, 0, 0], sizes = [2, 32, 8], strides = [1, 1, 1]} : vector<2x32x32xbf16> to vector<2x32x8xbf16>
    %49 = vector.extract_strided_slice %43 {offsets = [0, 0, 0], sizes = [2, 32, 8], strides = [1, 1, 1]} : vector<2x32x32xbf16> to vector<2x32x8xbf16>
    "tpu.trace_start"() <{level = 10 : i32, message = "bqd,bkd->bqk"}> : () -> ()
    %cst_33 = arith.constant dense<0.000000e+00> : vector<2x32x32xf32>
    %50 = tpu.matmul %47, %48, %cst_33 {dimension_numbers = #tpu.dot_dimension_numbers<[2], [2], [1], [1], [0, 0, 0, 1, 1, 1], [0], [0]>} : vector<2x32x8xbf16>, vector<2x32x8xbf16>, vector<2x32x32xf32> -> vector<2x32x32xf32>
    %cst_34 = arith.constant -1.000000e+30 : f32
    "tpu.trace_stop"() : () -> ()
    %51 = vector.shape_cast %46 : vector<1x1x32xi1> to vector<1x1x32xi1>
    %52 = vector.broadcast %51 : vector<1x1x32xi1> to vector<2x32x32xi1>
    %53 = vector.broadcast %cst_34 : f32 to vector<2x32x32xf32>
    %54 = arith.select %52, %50, %53 : vector<2x32x32xi1>, vector<2x32x32xf32>
    %cst_35 = arith.constant dense<0xFF800000> : vector<2x32xf32>
    %55 = vector.multi_reduction <maximumf>, %54, %cst_35 [2] : vector<2x32x32xf32> to vector<2x32xf32>
    %56 = vector.shape_cast %55 : vector<2x32xf32> to vector<2x32x1xf32>
    %57 = vector.broadcast %56 : vector<2x32x1xf32> to vector<2x32x32xf32>
    %58 = arith.subf %54, %57 : vector<2x32x32xf32>
    %59 = math.exp %58 : vector<2x32x32xf32>
    %cst_36 = arith.constant dense<0.000000e+00> : vector<2x32xf32>
    %60 = vector.multi_reduction <add>, %59, %cst_36 [2] : vector<2x32x32xf32> to vector<2x32xf32>
    %61 = vector.shape_cast %60 : vector<2x32xf32> to vector<2x32x1xf32>
    %62 = tpu.reciprocal %61 {approx = true} : vector<2x32x1xf32> -> vector<2x32x1xf32>
    %63 = vector.broadcast %62 : vector<2x32x1xf32> to vector<2x32x32xf32>
    %64 = arith.mulf %59, %63 : vector<2x32x32xf32>
    %65 = arith.truncf %64 : vector<2x32x32xf32> to vector<2x32x32xbf16>
    "tpu.trace_start"() <{level = 10 : i32, message = "bqk,bkd->bqd"}> : () -> ()
    %cst_37 = arith.constant dense<0.000000e+00> : vector<2x32x8xf32>
    %66 = tpu.matmul %65, %49, %cst_37 {dimension_numbers = #tpu.dot_dimension_numbers<[2], [1], [1], [2], [0, 0, 0, 1, 1, 2], [0], [0]>} : vector<2x32x32xbf16>, vector<2x32x8xbf16>, vector<2x32x8xf32> -> vector<2x32x8xf32>
    "tpu.trace_stop"() : () -> ()
    %67 = vector.extract_strided_slice %39 {offsets = [0, 0, 8], sizes = [2, 32, 8], strides = [1, 1, 1]} : vector<2x32x32xbf16> to vector<2x32x8xbf16>
    %68 = vector.extract_strided_slice %41 {offsets = [0, 0, 8], sizes = [2, 32, 8], strides = [1, 1, 1]} : vector<2x32x32xbf16> to vector<2x32x8xbf16>
    %69 = vector.extract_strided_slice %43 {offsets = [0, 0, 8], sizes = [2, 32, 8], strides = [1, 1, 1]} : vector<2x32x32xbf16> to vector<2x32x8xbf16>
    "tpu.trace_start"() <{level = 10 : i32, message = "bqd,bkd->bqk"}> : () -> ()
    %cst_38 = arith.constant dense<0.000000e+00> : vector<2x32x32xf32>
    %70 = tpu.matmul %67, %68, %cst_38 {dimension_numbers = #tpu.dot_dimension_numbers<[2], [2], [1], [1], [0, 0, 0, 1, 1, 1], [0], [0]>} : vector<2x32x8xbf16>, vector<2x32x8xbf16>, vector<2x32x32xf32> -> vector<2x32x32xf32>
    %cst_39 = arith.constant -1.000000e+30 : f32
    "tpu.trace_stop"() : () -> ()
    %71 = vector.shape_cast %46 : vector<1x1x32xi1> to vector<1x1x32xi1>
    %72 = vector.broadcast %71 : vector<1x1x32xi1> to vector<2x32x32xi1>
    %73 = vector.broadcast %cst_39 : f32 to vector<2x32x32xf32>
    %74 = arith.select %72, %70, %73 : vector<2x32x32xi1>, vector<2x32x32xf32>
    %cst_40 = arith.constant dense<0xFF800000> : vector<2x32xf32>
    %75 = vector.multi_reduction <maximumf>, %74, %cst_40 [2] : vector<2x32x32xf32> to vector<2x32xf32>
    %76 = vector.shape_cast %75 : vector<2x32xf32> to vector<2x32x1xf32>
    %77 = vector.broadcast %76 : vector<2x32x1xf32> to vector<2x32x32xf32>
    %78 = arith.subf %74, %77 : vector<2x32x32xf32>
    %79 = math.exp %78 : vector<2x32x32xf32>
    %cst_41 = arith.constant dense<0.000000e+00> : vector<2x32xf32>
    %80 = vector.multi_reduction <add>, %79, %cst_41 [2] : vector<2x32x32xf32> to vector<2x32xf32>
    %81 = vector.shape_cast %80 : vector<2x32xf32> to vector<2x32x1xf32>
    %82 = tpu.reciprocal %81 {approx = true} : vector<2x32x1xf32> -> vector<2x32x1xf32>
    %83 = vector.broadcast %82 : vector<2x32x1xf32> to vector<2x32x32xf32>
    %84 = arith.mulf %79, %83 : vector<2x32x32xf32>
    %85 = arith.truncf %84 : vector<2x32x32xf32> to vector<2x32x32xbf16>
    "tpu.trace_start"() <{level = 10 : i32, message = "bqk,bkd->bqd"}> : () -> ()
    %cst_42 = arith.constant dense<0.000000e+00> : vector<2x32x8xf32>
    %86 = tpu.matmul %85, %69, %cst_42 {dimension_numbers = #tpu.dot_dimension_numbers<[2], [1], [1], [2], [0, 0, 0, 1, 1, 2], [0], [0]>} : vector<2x32x32xbf16>, vector<2x32x8xbf16>, vector<2x32x8xf32> -> vector<2x32x8xf32>
    "tpu.trace_stop"() : () -> ()
    %87 = vector.extract_strided_slice %39 {offsets = [0, 0, 16], sizes = [2, 32, 8], strides = [1, 1, 1]} : vector<2x32x32xbf16> to vector<2x32x8xbf16>
    %88 = vector.extract_strided_slice %41 {offsets = [0, 0, 16], sizes = [2, 32, 8], strides = [1, 1, 1]} : vector<2x32x32xbf16> to vector<2x32x8xbf16>
    %89 = vector.extract_strided_slice %43 {offsets = [0, 0, 16], sizes = [2, 32, 8], strides = [1, 1, 1]} : vector<2x32x32xbf16> to vector<2x32x8xbf16>
    "tpu.trace_start"() <{level = 10 : i32, message = "bqd,bkd->bqk"}> : () -> ()
    %cst_43 = arith.constant dense<0.000000e+00> : vector<2x32x32xf32>
    %90 = tpu.matmul %87, %88, %cst_43 {dimension_numbers = #tpu.dot_dimension_numbers<[2], [2], [1], [1], [0, 0, 0, 1, 1, 1], [0], [0]>} : vector<2x32x8xbf16>, vector<2x32x8xbf16>, vector<2x32x32xf32> -> vector<2x32x32xf32>
    %cst_44 = arith.constant -1.000000e+30 : f32
    "tpu.trace_stop"() : () -> ()
    %91 = vector.shape_cast %46 : vector<1x1x32xi1> to vector<1x1x32xi1>
    %92 = vector.broadcast %91 : vector<1x1x32xi1> to vector<2x32x32xi1>
    %93 = vector.broadcast %cst_44 : f32 to vector<2x32x32xf32>
    %94 = arith.select %92, %90, %93 : vector<2x32x32xi1>, vector<2x32x32xf32>
    %cst_45 = arith.constant dense<0xFF800000> : vector<2x32xf32>
    %95 = vector.multi_reduction <maximumf>, %94, %cst_45 [2] : vector<2x32x32xf32> to vector<2x32xf32>
    %96 = vector.shape_cast %95 : vector<2x32xf32> to vector<2x32x1xf32>
    %97 = vector.broadcast %96 : vector<2x32x1xf32> to vector<2x32x32xf32>
    %98 = arith.subf %94, %97 : vector<2x32x32xf32>
    %99 = math.exp %98 : vector<2x32x32xf32>
    %cst_46 = arith.constant dense<0.000000e+00> : vector<2x32xf32>
    %100 = vector.multi_reduction <add>, %99, %cst_46 [2] : vector<2x32x32xf32> to vector<2x32xf32>
    %101 = vector.shape_cast %100 : vector<2x32xf32> to vector<2x32x1xf32>
    %102 = tpu.reciprocal %101 {approx = true} : vector<2x32x1xf32> -> vector<2x32x1xf32>
    %103 = vector.broadcast %102 : vector<2x32x1xf32> to vector<2x32x32xf32>
    %104 = arith.mulf %99, %103 : vector<2x32x32xf32>
    %105 = arith.truncf %104 : vector<2x32x32xf32> to vector<2x32x32xbf16>
    "tpu.trace_start"() <{level = 10 : i32, message = "bqk,bkd->bqd"}> : () -> ()
    %cst_47 = arith.constant dense<0.000000e+00> : vector<2x32x8xf32>
    %106 = tpu.matmul %105, %89, %cst_47 {dimension_numbers = #tpu.dot_dimension_numbers<[2], [1], [1], [2], [0, 0, 0, 1, 1, 2], [0], [0]>} : vector<2x32x32xbf16>, vector<2x32x8xbf16>, vector<2x32x8xf32> -> vector<2x32x8xf32>
    "tpu.trace_stop"() : () -> ()
    %107 = vector.extract_strided_slice %39 {offsets = [0, 0, 24], sizes = [2, 32, 8], strides = [1, 1, 1]} : vector<2x32x32xbf16> to vector<2x32x8xbf16>
    %108 = vector.extract_strided_slice %41 {offsets = [0, 0, 24], sizes = [2, 32, 8], strides = [1, 1, 1]} : vector<2x32x32xbf16> to vector<2x32x8xbf16>
    %109 = vector.extract_strided_slice %43 {offsets = [0, 0, 24], sizes = [2, 32, 8], strides = [1, 1, 1]} : vector<2x32x32xbf16> to vector<2x32x8xbf16>
    "tpu.trace_start"() <{level = 10 : i32, message = "bqd,bkd->bqk"}> : () -> ()
    %cst_48 = arith.constant dense<0.000000e+00> : vector<2x32x32xf32>
    %110 = tpu.matmul %107, %108, %cst_48 {dimension_numbers = #tpu.dot_dimension_numbers<[2], [2], [1], [1], [0, 0, 0, 1, 1, 1], [0], [0]>} : vector<2x32x8xbf16>, vector<2x32x8xbf16>, vector<2x32x32xf32> -> vector<2x32x32xf32>
    %cst_49 = arith.constant -1.000000e+30 : f32
    "tpu.trace_stop"() : () -> ()
    %111 = vector.shape_cast %46 : vector<1x1x32xi1> to vector<1x1x32xi1>
    %112 = vector.broadcast %111 : vector<1x1x32xi1> to vector<2x32x32xi1>
    %113 = vector.broadcast %cst_49 : f32 to vector<2x32x32xf32>
    %114 = arith.select %112, %110, %113 : vector<2x32x32xi1>, vector<2x32x32xf32>
    %cst_50 = arith.constant dense<0xFF800000> : vector<2x32xf32>
    %115 = vector.multi_reduction <maximumf>, %114, %cst_50 [2] : vector<2x32x32xf32> to vector<2x32xf32>
    %116 = vector.shape_cast %115 : vector<2x32xf32> to vector<2x32x1xf32>
    %117 = vector.broadcast %116 : vector<2x32x1xf32> to vector<2x32x32xf32>
    %118 = arith.subf %114, %117 : vector<2x32x32xf32>
    %119 = math.exp %118 : vector<2x32x32xf32>
    %cst_51 = arith.constant dense<0.000000e+00> : vector<2x32xf32>
    %120 = vector.multi_reduction <add>, %119, %cst_51 [2] : vector<2x32x32xf32> to vector<2x32xf32>
    %121 = vector.shape_cast %120 : vector<2x32xf32> to vector<2x32x1xf32>
    %122 = tpu.reciprocal %121 {approx = true} : vector<2x32x1xf32> -> vector<2x32x1xf32>
    %123 = vector.broadcast %122 : vector<2x32x1xf32> to vector<2x32x32xf32>
    %124 = arith.mulf %119, %123 : vector<2x32x32xf32>
    %125 = arith.truncf %124 : vector<2x32x32xf32> to vector<2x32x32xbf16>
    "tpu.trace_start"() <{level = 10 : i32, message = "bqk,bkd->bqd"}> : () -> ()
    %cst_52 = arith.constant dense<0.000000e+00> : vector<2x32x8xf32>
    %126 = tpu.matmul %125, %109, %cst_52 {dimension_numbers = #tpu.dot_dimension_numbers<[2], [1], [1], [2], [0, 0, 0, 1, 1, 2], [0], [0]>} : vector<2x32x32xbf16>, vector<2x32x8xbf16>, vector<2x32x8xf32> -> vector<2x32x8xf32>
    "tpu.trace_stop"() : () -> ()
    %127 = tpu.concatenate %66, %86, %106, %126 in 2 : vector<2x32x8xf32>, vector<2x32x8xf32>, vector<2x32x8xf32>, vector<2x32x8xf32> -> vector<2x32x32xf32>
    %128 = arith.truncf %127 : vector<2x32x32xf32> to vector<2x32x32xbf16>
    %129 = vector.shape_cast %128 : vector<2x32x32xbf16> to vector<64x32xbf16>
    %c0_53 = arith.constant 0 : index
    %c0_54 = arith.constant 0 : index
    %130 = vector.load %arg9[%c0_53, %c0_54] : memref<32x128xbf16, #tpu.memory_space<vmem>>, vector<32x128xbf16>
    %cst_55 = arith.constant dense<0.000000e+00> : vector<64x128xf32>
    %131 = tpu.matmul %129, %130, %cst_55 {dimension_numbers = #tpu.dot_dimension_numbers<[1], [0], [0], [1], [0, 0, 1, 1], [], []>} : vector<64x32xbf16>, vector<32x128xbf16>, vector<64x128xf32> -> vector<64x128xf32>
    %c0_56 = arith.constant 0 : index
    %c0_57 = arith.constant 0 : index
    %132 = vector.load %arg10[%c0_56, %c0_57] : memref<1x128xf32, #tpu.memory_space<vmem>>, vector<1x128xf32>
    %133 = vector.broadcast %132 : vector<1x128xf32> to vector<64x128xf32>
    %134 = arith.addf %131, %133 : vector<64x128xf32>
    %135 = vector.shape_cast %134 : vector<64x128xf32> to vector<2x32x128xf32>
    %136 = tpu.transpose %135, [1, 0, 2] : vector<2x32x128xf32> -> vector<32x2x128xf32>
    %137 = vector.extract_strided_slice %136 {offsets = [0, 0, 0], sizes = [17, 2, 128], strides = [1, 1, 1]} : vector<32x2x128xf32> to vector<17x2x128xf32>
    %c0_58 = arith.constant 0 : index
    %c0_59 = arith.constant 0 : index
    %c0_60 = arith.constant 0 : index
    %138 = vector.load %arg11[%c0_58, %c0_59, %c0_60] : memref<17x2x128xf32, #tpu.memory_space<vmem>>, vector<17x2x128xf32>
    tpu.vector_store %arg11[%c0_58, %c0_59, %c0_60], %137 {strides = array<i32>} : memref<17x2x128xf32, #tpu.memory_space<vmem>>, vector<17x2x128xf32>,
    return
  }
  func.func @transform_0(%arg0: i32) -> (i32, i32, i32) {
    %c0_i32 = arith.constant 0 : i32
    %c0_i32_0 = arith.constant 0 : i32
    %c0_i32_1 = arith.constant 0 : i32
    return %arg0, %c0_i32, %c0_i32_0 : i32, i32, i32
  }
  func.func @transform_1(%arg0: i32) -> (i32, i32) {
    %c0_i32 = arith.constant 0 : i32
    %c0_i32_0 = arith.constant 0 : i32
    %c0_i32_1 = arith.constant 0 : i32
    return %c0_i32, %c0_i32_0 : i32, i32
  }
  func.func @transform_2(%arg0: i32) -> (i32, i32) {
    %c0_i32 = arith.constant 0 : i32
    %c0_i32_0 = arith.constant 0 : i32
    %c0_i32_1 = arith.constant 0 : i32
    return %c0_i32, %c0_i32_0 : i32, i32
  }
  func.func @transform_3(%arg0: i32) -> (i32, i32) {
    %c0_i32 = arith.constant 0 : i32
    %c0_i32_0 = arith.constant 0 : i32
    %c0_i32_1 = arith.constant 0 : i32
    return %c0_i32, %c0_i32_0 : i32, i32
  }
  func.func @transform_4(%arg0: i32) -> (i32, i32) {
    %c0_i32 = arith.constant 0 : i32
    %c0_i32_0 = arith.constant 0 : i32
    %c0_i32_1 = arith.constant 0 : i32
    return %c0_i32, %c0_i32_0 : i32, i32
  }
  func.func @transform_5(%arg0: i32) -> (i32, i32) {
    %c0_i32 = arith.constant 0 : i32
    %c0_i32_0 = arith.constant 0 : i32
    %c0_i32_1 = arith.constant 0 : i32
    return %c0_i32, %c0_i32_0 : i32, i32
  }
  func.func @transform_6(%arg0: i32) -> (i32, i32) {
    %c0_i32 = arith.constant 0 : i32
    %c0_i32_0 = arith.constant 0 : i32
    %c0_i32_1 = arith.constant 0 : i32
    return %c0_i32, %c0_i32_0 : i32, i32
  }
  func.func @transform_7(%arg0: i32) -> (i32, i32) {
    %c0_i32 = arith.constant 0 : i32
    %c0_i32_0 = arith.constant 0 : i32
    %c0_i32_1 = arith.constant 0 : i32
    return %c0_i32, %c0_i32_0 : i32, i32
  }
  func.func @transform_8(%arg0: i32) -> (i32, i32) {
    %c0_i32 = arith.constant 0 : i32
    %c0_i32_0 = arith.constant 0 : i32
    %c0_i32_1 = arith.constant 0 : i32
    return %c0_i32, %c0_i32_0 : i32, i32
  }
  func.func @transform_9(%arg0: i32) -> (i32, i32) {
    %c0_i32 = arith.constant 0 : i32
    %c0_i32_0 = arith.constant 0 : i32
    %c0_i32_1 = arith.constant 0 : i32
    return %c0_i32, %c0_i32_0 : i32, i32
  }
  func.func @transform_10(%arg0: i32) -> (i32, i32, i32) {
    %c0_i32 = arith.constant 0 : i32
    %c0_i32_0 = arith.constant 0 : i32
    %c0_i32_1 = arith.constant 0 : i32
    return %c0_i32, %arg0, %c0_i32_0 : i32, i32, i32
  }
}

</mosaic_0001>

<bundles_post_ra>
// kernel: tpu_custom_call.1
= control target key start
LH: loop header
LB: loop body
LE: loop exit
PB: predicated region body
PF: predicated region fallthrough
CT: control target
= control target key end

     0   :  { %15 = vsyncpa [#allocation4], 0  ;;  %s3907_s0 = inlined_call_operand.vmem [shape: bf16[2,32,16], index: 0, kind: input, shape index: {}]   ;;  %s3908_s1 = inlined_call_operand.hbm [shape: bf16[17,32], index: 1, kind: input, shape index: {}]   ;;  %s3909_s2 = inlined_call_operand.vmem [shape: bf16[32,32], index: 2, kind: input, shape index: {}]   ;;  %s3910_s3 = inlined_call_operand.vmem [shape: f32[1,32], index: 3, kind: input, shape index: {}]   ;;  %s3911_s4 = inlined_call_operand.vmem [shape: bf16[32,32], index: 4, kind: input, shape index: {}]   ;;  %s3912_s5 = inlined_call_operand.vmem [shape: f32[1,32], index: 5, kind: input, shape index: {}]   ;;  %s3913_s6 = inlined_call_operand.vmem [shape: bf16[32,32], index: 6, kind: input, shape index: {}]   ;;  %s3914_s7 = inlined_call_operand.vmem [shape: f32[1,32], index: 7, kind: input, shape index: {}]   ;;  %s3915_s8 = inlined_call_operand.vmem [shape: bf16[32,128], index: 8, kind: input, shape index: {}]   ;;  %s3916_s9 = inlined_call_operand.vmem [shape: f32[1,128], index: 9, kind: input, shape index: {}]   ;;  %s3917_s10 = inlined_call_operand.hbm [shape: f32[17,2,128], index: 10, kind: output, shape index: {}]  }
   0x1   :  { %16 = vsyncpa [#allocation5], 0  ;;  %s3119_s13 = smov [#allocation3]   ;;  %s3071_s17 = scalar_lea.hbm %s3908_s1, 192 }
   0x2   :  { %s24_s14 = sshll.u32 %s3119_s13, 4  ;;  %p3072_p0 = scmp.ne.s32.totalorder %s3908_s1, %s3071_s17  ;;  %s25_s14 = int_to_ptr.vmem [resolvable:$true] %s24_s14 }
   0x3   :  { %p3075_p1 = scmp.lt.u32.totalorder %s3071_s17, %s3908_s1 }
   0x5   :  { %p3077_p2 = pnand %p3075_p1, %p3072_p0 }
   0x7   :  { %3080 = shalt.err (!%p3077_p2)
}
   0x8   :  { %s3081_s22 = scalar_lea.vmem %s25_s14, 192  ;;  %p3086_p4 = scmp.lt.s32.totalorder %s25_s14, %s25_s14 }
   0x9   :  { %p3082_p3 = scmp.ne.s32.totalorder %s25_s14, %s3081_s22  ;;  %p3087_p5 = scmp.lt.s32.totalorder %s3081_s22, %s3081_s22 }
   0xb   :  { %p3088_p6 = por %p3087_p5, %p3086_p4 }
   0xd   :  { %p3089_p7 = pnand %p3088_p6, %p3082_p3 }
   0xf   :  { %3092 = shalt.err (!%p3089_p7)
}
  0x10   :  { %s3120_s23 = smov 64   ;;  %s3121_s24 = smov 4  }
  0x11   :  { %30 = dma.hbm_to_vmem [thread:$0]  %s3908_s1, 192, %s25_s14, [#allocation4], %s3120_s23, %s3120_s23, %s3121_s24  }
  0x12   :  { %3115 = dma.done.wait [#allocation4], 192  }
  0x13   :  { %3116 = vsyncadd [#allocation4], 4294967104  ;;  %v3205_v0 = vld [vmem:[%s3907_s0 + $0x18] sm:$0xff]   ;;  %vm67_vm0 = vcmask 130048   ;;  %v3210_v1 = vld [vmem:[%s3907_s0 + $0x10] sm:$0xff]   ;;  %v163_v20 = vlaneseq  ;;  %v3122_v26 = vmov 0  }
  0x14   :  { %v65_v2 = vunpack.c.l.bf16 %v3205_v0  ;;  %v63_v3 = vunpack.c.l.bf16 %v3210_v1  ;;  %v66_v4 = vunpack.c.h.bf16 %v3205_v0  ;;  %v3218_v5 = vld [vmem:[%s3907_s0] sm:$0xff]   ;;  %v64_v6 = vunpack.c.h.bf16 %v3210_v1  ;;  %v3226_v9 = vld [vmem:[%s3907_s0 + $0x8] sm:$0xff]   ;;  %2864 = vset.pattern.permute.xlu1 %v3122_v26  ;;  %2863 = vset.pattern.permute.xlu0 %v3122_v26  ;;  %s3124_s26 = smov 112   ;;  %s3125_s27 = smov 104  }
  0x15   :  { %v60_v12 = vunpack.c.h.bf16 %v3218_v5  ;;  %v59_v13 = vunpack.c.l.bf16 %v3218_v5  ;;  %v62_v16 = vunpack.c.h.bf16 %v3226_v9  ;;  %v61_v17 = vunpack.c.l.bf16 %v3226_v9  ;;  %v157_v22 = vld [vmem:[#allocation3] sm:$0x1]  ;;  %s3126_s28 = smov 8   ;;  %s3127_s29 = smov 16  }
  0x16   :  { %v86_v7 = vsel %vm67_vm0, %v65_v2, 0.0  ;;  %v80_v8 = vsel %vm67_vm0, %v63_v3, 0.0  ;;  %v89_v10 = vsel %vm67_vm0, %v66_v4, 0.0  ;;  %v83_v11 = vsel %vm67_vm0, %v64_v6, 0.0  ;;  %v2931_v6 = vld [vmem:[%s3909_s2] sm:$0xff]   ;;  %s3128_s13 = smov 24  }
  0x17   :  { %87 = vadd.xlane.f32.xlu1 %v86_v7  ;;  %81 = vadd.xlane.f32.xlu0 %v80_v8  ;;  %v71_v14 = vsel %vm67_vm0, %v60_v12, 0.0  ;;  %v68_v15 = vsel %vm67_vm0, %v59_v13, 0.0  ;;  %v77_v18 = vsel %vm67_vm0, %v62_v16, 0.0  ;;  %v74_v19 = vsel %vm67_vm0, %v61_v17, 0.0  ;;  %v2932_v7 = vld [vmem:[%s3909_s2 + $0x8] sm:$0xff]   ;;  %v3251_v8 = vld [vmem:[%s3913_s6] sm:$0xff]  }
  0x18   :  { %v3239_v21 = vshrl.u32 %v163_v20, 7  ;;  %v161_v23 = vunpack.c.l.bf16 %v157_v22  ;;  %2651 = vmatprep.subr.bf16.mxu0 %v2931_v6  ;;  %2827 = vmatprep.subr.bf16.mxu1 %v2931_v6  ;;  %v2929_v17 = vld [vmem:[#allocation3] sm:$0xff]   ;;  %vm245_vm1 = vcmask 130112   ;;  %vm252_vm2 = vcmask 195712  }
  0x19   :  { %2652 = vmatpush3.bf16.msra.mxu0 %v2931_v6  ;;  %2829 = vmatpush3.bf16.msra.mxu1 %v2931_v6  ;;  %v305_v22 = vshll.u32 %v2929_v17, 16  ;;  %vm259_vm3 = vcmask 261312   ;;  %vm284_vm4 = vcmask 253952   ;;  %vm285_vm5 = vsmask.f32 256 }
  0x1a   :  { %v165_v24 = vsub.s32 0, %v3239_v21  ;;  %2653 = vmatprep.subr.bf16.mxu0 %v2932_v7  ;;  %2828 = vmatprep.subr.bf16.mxu1 %v2932_v7  ;;  %vm3277_vm6 = vmand %vm284_vm4, %vm285_vm5  ;;  %vm301_vm7 = vsmask.f32 7424  ;;  %vm335_vm8 = vcmask 261120   ;;  %vm336_vm9 = vsmask.f32 7938 }
  0x1b   :  { %90 = vadd.xlane.f32.xlu1 %v89_v10  ;;  %84 = vadd.xlane.f32.xlu0 %v83_v11  ;;  %v3257_v10 = vld [vmem:[%s3911_s4] sm:$0xff]   ;;  %v3265_v11 = vand.u32 127, %v163_v20  ;;  %v2930_v20 = vld [vmem:[#allocation3 + $0x8] ss:$0 sps:$4 sm:$0x11]   ;;  %vm3292_vm10 = vmand %vm335_vm8, %vm336_vm9  ;;  %vm650_vm11 = vcmask 64512  }
  0x1c   :  { %v166_v25 = vrot.slane %v161_v23, %v165_v24  ;;  %vm2189_vm13 = vcmask 195584  }
  0x1d   :  { %2654 = vmatpush3.bf16.msra.mxu0 %v2932_v7  ;;  %2830 = vmatpush3.bf16.msra.mxu1 %v2932_v7  ;;  %v240_v12 = vadd.s32 4294967288, %v3265_v11  ;;  %v247_v13 = vadd.s32 4294967280, %v3265_v11  ;;  %vm649_vm12 = vcmp.lt.s32.totalorder %v3265_v11, 17 }
  0x1e   :  { %2675 = vmatprep.subr.bf16.mxu0 %v3251_v8  ;;  %2663 = vmatprep.subr.bf16.mxu1 %v3257_v10 }
  0x1f   :  { %72 = vadd.xlane.f32.xlu1 %v71_v14  ;;  %69 = vadd.xlane.f32.xlu0 %v68_v15  ;;  %v254_v14 = vadd.s32 4294967272, %v3265_v11  ;;  %v243_v15 = vsub.s32 %v240_v12, %v3239_v21 }
  0x23   :  { %78 = vadd.xlane.f32.xlu1 %v77_v18  ;;  %75 = vadd.xlane.f32.xlu0 %v74_v19 }
  0x34   :  { %172 = vbcast.lane.b32.xlu1 %v166_v25, 264 }
  0x38   :  { %176 = vbcast.lane.b32.xlu1 %v166_v25, 272 }
  0x39   :  { %168 = vbcast.lane.b32.xlu0 %v166_v25, 256 }
  0x3c   :  { %180 = vbcast.lane.b32.xlu1 %v166_v25, 280 }
  0xa4   :  { %v88_v27 = vpop.xlane.xlu1 %87  ;;  %v82_v28 = vpop.xlane.xlu0 %81 }
  0xa5   :  { %v97_v35 = vmul.f32 0.0625, %v82_v28  ;;  %v99_v45 = vmul.f32 0.0625, %v88_v27 }
  0xa8   :  { %v91_v29 = vpop.xlane.xlu1 %90  ;;  %v85_v30 = vpop.xlane.xlu0 %84 }
  0xa9   :  { %v98_v36 = vmul.f32 0.0625, %v85_v30  ;;  %v100_v46 = vmul.f32 0.0625, %v91_v29  ;;  %v303_v29 = vshrl.u32 %v2929_v17, 16  ;;  %v307_v30 = vrot.slane %v305_v22, 1  ;;  %v2934_v17 = vld [vmem:[%s3913_s6 + $0x8] sm:$0xff]  }
  0xac   :  { %v73_v31 = vpop.xlane.xlu1 %72  ;;  %v70_v32 = vpop.xlane.xlu0 %69 }
  0xad   :  { %v94_v47 = vmul.f32 0.0625, %v73_v31  ;;  %v93_v48 = vmul.f32 0.0625, %v70_v32  ;;  %v310_v31 = vshll.u32 %v2930_v20, 16  ;;  %v2508_v32 = vld [vmem:[%s3914_s7] ss:$0 sm:$0xff] }
  0xb0   :  { %v79_v33 = vpop.xlane.xlu1 %78  ;;  %v76_v34 = vpop.xlane.xlu0 %75 }
  0xb1   :  { %v96_v54 = vmul.f32 0.0625, %v79_v33  ;;  %v95_v56 = vmul.f32 0.0625, %v76_v34  ;;  %v290_v33 = vld [vmem:[#allocation2 + $0x10] sm:$0x1] }
  0xb4   :  { %v173_v37 = vpop.permute.xlu1 %172  ;;  %v169_v38 = vpop.permute.xlu0 %168 }
  0xb5   :  { %v191_v39 = vadd.f32 %v173_v37, %v98_v36  ;;  %v190_v40 = vadd.f32 %v169_v38, %v97_v35  ;;  %v187_v50 = vadd.f32 %v173_v37, %v94_v47  ;;  %v186_v51 = vadd.f32 %v169_v38, %v93_v48 }
  0xb7   :  { %v196_v41 = vpack.c.bf16 %v191_v39, %v190_v40  ;;  %v194_v57 = vpack.c.bf16 %v187_v50, %v186_v51  ;;  %v287_v50 = vld [vmem:[#allocation2] sm:$0x1] }
  0xb8   :  { %v177_v42 = vpop.permute.xlu1 %176 }
  0xb9   :  { %v207_v43 = vunpack.c.h.b16 %v196_v41  ;;  %v206_v44 = vunpack.c.l.b16 %v196_v41  ;;  %v192_v52 = vadd.f32 %v177_v42, %v99_v45  ;;  %v188_v61 = vadd.f32 %v177_v42, %v95_v56 }
  0xba   :  { %v203_v63 = vunpack.c.h.b16 %v194_v57  ;;  %v202_v2 = vunpack.c.l.b16 %v194_v57  ;;  %v308_v41 = vor.u32 %v307_v30, %v303_v29  ;;  %v312_v42 = vrot.slane %v310_v31, 1 }
  0xbb   :  { %226 = vperm.xlu1 %2864, %v207_v43   ;;  %223 = vperm.xlu0 %2863, %v206_v44  }
  0xbc   :  { %v181_v49 = vpop.permute.xlu1 %180 }
  0xbd   :  { %v193_v53 = vadd.f32 %v181_v49, %v100_v46  ;;  %v189_v58 = vadd.f32 %v181_v49, %v96_v54  ;;  %v313_v49 = vsel %vm301_vm7, %v308_v41, %v312_v42 }
  0xbf   :  { %v197_v55 = vpack.c.bf16 %v193_v53, %v192_v52  ;;  %v195_v62 = vpack.c.bf16 %v189_v58, %v188_v61  ;;  %v341_v58 = vld [vmem:[#allocation2 + $0x8] sm:$0x1] }
  0xc1   :  { %v208_v59 = vunpack.c.l.b16 %v197_v55  ;;  %v209_v60 = vunpack.c.h.b16 %v197_v55  ;;  %v205_v3 = vunpack.c.h.b16 %v195_v62  ;;  %v204_v4 = vunpack.c.l.b16 %v195_v62 }
  0xc3   :  { %229 = vperm.xlu1 %2864, %v208_v59   ;;  %232 = vperm.xlu0 %2863, %v209_v60  }
  0xc7   :  { %214 = vperm.xlu0 %2863, %v203_v63   ;;  %211 = vperm.xlu1 %2864, %v202_v2  }
  0xcb   :  { %220 = vperm.xlu0 %2863, %v205_v3   ;;  %217 = vperm.xlu1 %2864, %v204_v4   ;;  %v347_v4 = vld [vmem:[#allocation2 + $0x18] sm:$0x1] }
  0xe9   :  { %125 = vxpose.xlu0.c.b16.start [1/2] (short) (narrow) %v3218_v5, 16  ;;  %v238_v5 = vsub.s32 %v3265_v11, %v3239_v21 }
  0xed   :  { %126 = vxpose.xlu0.c.b16.end [2/2] (short) (narrow) %v3226_v9, 16 }
  0xee   :  { %141 = vxpose.xlu1.c.b16.start [1/2] (short) (narrow) %v3210_v1, 16  ;;  %v250_v1 = vsub.s32 %v247_v13, %v3239_v21 }
  0xf2   :  { %142 = vxpose.xlu1.c.b16.end [2/2] (short) (narrow) %v3205_v0, 16  ;;  %v257_v0 = vsub.s32 %v254_v14, %v3239_v21 }
 0x13a   :  { %v227_v16 = vpop.permute.xlu1 %226  ;;  %v224_v9 = vpop.permute.xlu0 %223 }
 0x13b   :  { %v268_v18 = vrot.slane %v227_v16, %v243_v15  ;;  %v264_v19 = vrot.slane %v224_v9, %v238_v5 }
 0x13d   :  { %v269_v27 = vsel %vm245_vm1, %v268_v18, %v264_v19  ;;  %v2936_v18 = vld [vmem:[%s3911_s4 + $0x8] sm:$0xff]  }
 0x142   :  { %v230_v23 = vpop.permute.xlu1 %229  ;;  %v233_v24 = vpop.permute.xlu0 %232 }
 0x143   :  { %v273_v25 = vrot.slane %v230_v23, %v250_v1  ;;  %v278_v26 = vrot.slane %v233_v24, %v257_v0 }
 0x145   :  { %v274_v28 = vsel %vm252_vm2, %v273_v25, %v269_v27 }
 0x146   :  { %v279_v34 = vsel %vm259_vm3, %v278_v26, %v274_v28  ;;  %v215_v35 = vpop.permute.xlu0 %214  ;;  %v212_v36 = vpop.permute.xlu1 %211 }
 0x147   :  { %v281_v37 = vpack.c.b16 %v279_v34, %v279_v34  ;;  %v244_v38 = vrot.slane %v215_v35, %v243_v15  ;;  %v239_v39 = vrot.slane %v212_v36, %v238_v5 }
 0x149   :  { %v291_v40 = vsel %vm3277_vm6, %v281_v37, %v290_v33  ;;  %v246_v47 = vsel %vm245_vm1, %v244_v38, %v239_v39 }
 0x14a   :  { %292 = vst [vmem:[#allocation2 + $0x10] sm:$0x1] %v291_v40  ;;  %v221_v43 = vpop.permute.xlu0 %220  ;;  %v218_v44 = vpop.permute.xlu1 %217 }
 0x14b   :  { %v258_v45 = vrot.slane %v221_v43, %v257_v0  ;;  %v251_v46 = vrot.slane %v218_v44, %v250_v1 }
 0x14d   :  { %v253_v48 = vsel %vm252_vm2, %v251_v46, %v246_v47 }
 0x14e   :  { %v260_v51 = vsel %vm259_vm3, %v258_v45, %v253_v48 }
 0x14f   :  { %v280_v52 = vpack.c.b16 %v260_v51, %v260_v51  ;;  %v133_v53 = vpop.trf.xlu0  ;;  %v2501_v51 = vld [vmem:[%s3912_s5] ss:$0 sm:$0xff]  ;;  %s3123_s5 = smov 120  }
 0x150   :  { %v315_v54 = vadd.bf16 %v313_v49, %v133_v53 }
 0x151   :  { %v288_v55 = vsel %vm3277_vm6, %v280_v52, %v287_v50  ;;  %v344_v5 = vld [vmem:[#allocation2 + $0x10] sm:$0xff] }
 0x152   :  { %289 = vst [vmem:[#allocation2] sm:$0x1] %v288_v55  ;;  %v318_v56 = vshrl.u32 %v315_v54, 16  ;;  %v321_v57 = vshll.u32 %v315_v54, 16 }
 0x154   :  { %v320_v59 = vrot.slane %v318_v56, 7  ;;  %v149_v60 = vpop.trf.xlu1 }
 0x155   :  { %v316_v61 = vadd.bf16 %v313_v49, %v149_v60 }
 0x156   :  { %v323_v62 = vor.u32 %v321_v57, %v320_v59  ;;  %v342_v63 = vsel %vm3277_vm6, %v320_v59, %v341_v58 }
 0x157   :  { %343 = vst [vmem:[#allocation2 + $0x8] sm:$0x1] %v342_v63  ;;  %v325_v3 = vshrl.u32 %v316_v61, 16  ;;  %v328_v12 = vshll.u32 %v316_v61, 16 }
 0x159   :  { %v338_v6 = vld [vmem:[#allocation2] sm:$0xff]  ;;  %v327_v7 = vrot.slane %v325_v3, 7 }
 0x15a   :  { %v339_v13 = vsel %vm3292_vm10, %v323_v62, %v338_v6 }
 0x15b   :  { %340 = vst [vmem:[#allocation2] sm:$0xff] %v339_v13  ;;  %v330_v14 = vor.u32 %v328_v12, %v327_v7  ;;  %v348_v15 = vsel %vm3277_vm6, %v327_v7, %v347_v4  ;;  %2655 = vmatprep.mubr.msk.bf16.mxu0 %vm335_vm8, %v339_v13 }
 0x15c   :  { %349 = vst [vmem:[#allocation2 + $0x18] sm:$0x1] %v348_v15 }
 0x15d   :  { %v345_v16 = vsel %vm3292_vm10, %v330_v14, %v344_v5 }
 0x15e   :  { %v350_v9 = vld [vmem:[#allocation2 + $0x8] sm:$0xff]  ;;  %346 = vst [vmem:[#allocation2 + $0x10] sm:$0xff] %v345_v16  ;;  %2659 = vmatprep.mubr.msk.bf16.mxu1 %vm335_vm8, %v345_v16 }
 0x15f   :  { %v351_v1 = vsel %vm3292_vm10, 0, %v350_v9 }
 0x160   :  { %352 = vst [vmem:[#allocation2 + $0x8] sm:$0xff] %v351_v1  ;;  %2656 = vmatmul.mubr.msk.bf16.vlgmr.msra.gmra.mrb[0].mxu0 %vm335_vm8, %v351_v1 }
 0x161   :  { %2676 = vmatpush3.bf16.msra.mxu0 %v3251_v8  ;;  %2679 = vmatprep.mubr.msk.bf16.mxu0 %vm335_vm8, %v339_v13  ;;  %v2494_v8 = vld [vmem:[%s3910_s3] ss:$0 sm:$0xff] }
 0x162   :  { %2677 = vmatprep.subr.bf16.mxu0 %v2934_v17 }
 0x163   :  { %v353_v0 = vld [vmem:[#allocation2 + $0x18] sm:$0xff] }
 0x164   :  { %v354_v19 = vsel %vm3292_vm10, 0, %v353_v0 }
 0x165   :  { %355 = vst [vmem:[#allocation2 + $0x18] sm:$0xff] %v354_v19  ;;  %2660 = vmatmul.mubr.msk.bf16.vlgmr.msra.gmra.mrb[0].mxu1 %vm335_vm8, %v354_v19  ;;  %2678 = vmatpush3.bf16.msra.mxu0 %v2934_v17 }
 0x166   :  { %2664 = vmatpush3.bf16.msra.mxu1 %v3257_v10  ;;  %2667 = vmatprep.mubr.msk.bf16.mxu1 %vm335_vm8, %v339_v13 }
 0x167   :  { %2665 = vmatprep.subr.bf16.mxu1 %v2936_v18 }
 0x168   :  { %2680 = vmatmul.mubr.msk.bf16.vlgmr.msra.gmra.mrb[4].mxu0 %vm335_vm8, %v351_v1 }
 0x169   :  { %2683 = vmatprep.mubr.msk.bf16.mxu0 %vm335_vm8, %v345_v16 }
 0x16a   :  { %2666 = vmatpush3.bf16.msra.mxu1 %v2936_v18 }
 0x16d   :  { %2668 = vmatmul.mubr.msk.bf16.vlgmr.msra.gmra.mrb[4].mxu1 %vm335_vm8, %v351_v1 }
 0x16e   :  { %2671 = vmatprep.mubr.msk.bf16.mxu1 %vm335_vm8, %v345_v16 }
 0x170   :  { %2684 = vmatmul.mubr.msk.bf16.gmra.mrb[8].mxu0 %vm335_vm8, %v354_v19 }
 0x175   :  { %2672 = vmatmul.mubr.msk.bf16.gmra.mrb[8].mxu1 %vm335_vm8, %v354_v19 }
 0x233   :  { %v2657_v10 = vpop.f32.mrb[0].mxu0 }
 0x234   :  { %v439_v20 = vadd.f32 %v2657_v10, %v2494_v8  ;;  %v430_v22 = vpop.f32.mrb[1].mxu0 }
 0x235   :  { %v431_v23 = vadd.f32 %v2494_v8, %v430_v22  ;;  %v2658_v24 = vpop.f32.mrb[2].mxu0 }
 0x236   :  { %v442_v25 = vadd.f32 %v2658_v24, %v2494_v8  ;;  %v433_v26 = vpop.f32.mrb[3].mxu0 }
 0x237   :  { %v434_v27 = vadd.f32 %v2494_v8, %v433_v26 }
 0x238   :  { %v2661_v28 = vpop.f32.mrb[0].mxu1  ;;  %v3329_v29 = vpack.c.bf16 %v442_v25, %v439_v20 }
 0x239   :  { %v446_v30 = vpop.f32.mrb[1].mxu1  ;;  %v3331_v31 = vpack.c.bf16 %v434_v27, %v431_v23  ;;  %v455_v34 = vadd.f32 %v2661_v28, %v2494_v8 }
 0x23a   :  { %v2662_v33 = vpop.f32.mrb[2].mxu1  ;;  %v447_v38 = vadd.f32 %v2494_v8, %v446_v30 }
 0x23b   :  { %v458_v35 = vadd.f32 %v2662_v33, %v2494_v8  ;;  %v449_v36 = vpop.f32.mrb[3].mxu1  ;;  %v2681_v37 = vpop.f32.mrb[4].mxu0  ;;  %2691 = vmatprep.mubr.msk.bf16.mxu1 %vm650_vm11, %v3331_v31 }
 0x23c   :  { %v450_v39 = vadd.f32 %v2494_v8, %v449_v36  ;;  %v615_v40 = vadd.f32 %v2681_v37, %v2508_v32  ;;  %v606_v41 = vpop.f32.mrb[5].mxu0 }
 0x23d   :  { %v3338_v42 = vpack.c.bf16 %v458_v35, %v455_v34  ;;  %v607_v43 = vadd.f32 %v2508_v32, %v606_v41  ;;  %v2682_v44 = vpop.f32.mrb[6].mxu0 }
 0x23e   :  { %v3340_v45 = vpack.c.bf16 %v450_v39, %v447_v38  ;;  %v618_v46 = vadd.f32 %v2682_v44, %v2508_v32  ;;  %v609_v47 = vpop.f32.mrb[7].mxu0 }
 0x23f   :  { %v610_v48 = vadd.f32 %v2508_v32, %v609_v47 }
 0x240   :  { %v3342_v49 = vpack.c.bf16 %v618_v46, %v615_v40  ;;  %v2669_v50 = vpop.f32.mrb[4].mxu1  ;;  %2699 = vmatprep.mubr.msk.bf16.mxu0 %vm650_vm11, %v3340_v45 }
 0x241   :  { %v3349_v52 = vpack.c.bf16 %v610_v48, %v607_v43  ;;  %v518_v53 = vpop.f32.mrb[5].mxu1  ;;  %v527_v55 = vadd.f32 %v2669_v50, %v2501_v51 }
 0x242   :  { %v2670_v54 = vpop.f32.mrb[6].mxu1  ;;  %v519_v59 = vadd.f32 %v2501_v51, %v518_v53 }
 0x243   :  { %v530_v56 = vadd.f32 %v2670_v54, %v2501_v51  ;;  %v521_v57 = vpop.f32.mrb[7].mxu1  ;;  %v2685_v58 = vpop.f32.mrb[8].mxu0 }
 0x244   :  { %v522_v60 = vadd.f32 %v2501_v51, %v521_v57  ;;  %v631_v61 = vadd.f32 %v2685_v58, %v2508_v32  ;;  %v622_v62 = vpop.f32.mrb[9].mxu0 }
 0x245   :  { %v3351_v63 = vpack.c.bf16 %v530_v56, %v527_v55  ;;  %v2686_v2 = vpop.f32.mrb[10].mxu0  ;;  %v623_v7 = vadd.f32 %v2508_v32, %v622_v62 }
 0x246   :  { %v3353_v3 = vpack.c.bf16 %v522_v60, %v519_v59  ;;  %v634_v4 = vadd.f32 %v2686_v2, %v2508_v32  ;;  %v625_v6 = vpop.f32.mrb[11].mxu0 }
 0x247   :  { %v626_v12 = vadd.f32 %v2508_v32, %v625_v6  ;;  %v661_v20 = vsel %vm650_vm11, %v3351_v63, 0 }
 0x248   :  { %v3355_v13 = vpack.c.bf16 %v634_v4, %v631_v61  ;;  %v2673_v14 = vpop.f32.mrb[8].mxu1  ;;  %2831 = vmatprep.subr.msk.bf16.mxu1 %vm650_vm11, %v3353_v3  ;;  %v658_v15 = vsel %vm650_vm11, %v3353_v3, 0 }
 0x249   :  { %v3361_v5 = vpack.c.bf16 %v626_v12, %v623_v7  ;;  %v534_v16 = vpop.f32.mrb[9].mxu1  ;;  %2688 = vmatpush3.bf16.xpose.msra.mxu1 %v658_v15  ;;  %v543_v17 = vadd.f32 %v2673_v14, %v2501_v51 }
 0x24a   :  { %v2674_v9 = vpop.f32.mrb[10].mxu1  ;;  %2832 = vmatprep.subr.msk.bf16.mxu1 %vm650_vm11, %v3351_v63  ;;  %v535_v18 = vadd.f32 %v2501_v51, %v534_v16 }
 0x24b   :  { %v546_v1 = vadd.f32 %v2674_v9, %v2501_v51  ;;  %v537_v0 = vpop.f32.mrb[11].mxu1 }
 0x24c   :  { %v538_v19 = vadd.f32 %v2501_v51, %v537_v0 }
 0x24d   :  { %v3365_v8 = vpack.c.bf16 %v546_v1, %v543_v17 }
 0x24e   :  { %v3367_v10 = vpack.c.bf16 %v538_v19, %v535_v18 }
 0x24f   :  { %v722_v23 = vsel %vm650_vm11, %v3365_v8, 0 }
 0x250   :  { %2833 = vmatprep.subr.msk.bf16.mxu0 %vm650_vm11, %v3367_v10  ;;  %v719_v22 = vsel %vm650_vm11, %v3367_v10, 0 }
 0x251   :  { %2690 = vmatpush3.bf16.xpose.msra.mxu1 %v661_v20  ;;  %2696 = vmatpush3.bf16.xpose.msra.mxu0 %v719_v22 }
 0x252   :  { %2834 = vmatprep.subr.msk.bf16.mxu0 %vm650_vm11, %v3365_v8  ;;  %2703 = vmatprep.subr.bf16.mxu1 %v3349_v52 }
 0x258   :  { %2692 = vmatmul.mubr.msk.bf16.vlgmr.msra.gmra.mrb[12].mxu1 %vm650_vm11, %v3329_v29 }
 0x259   :  { %2698 = vmatpush3.bf16.xpose.msra.mxu0 %v722_v23  ;;  %2704 = vmatpush3.bf16.msra.mxu1 %v3349_v52 }
 0x25a   :  { %2705 = vmatprep.subr.bf16.mxu1 %v3342_v49 }
 0x25d   :  { %2706 = vmatpush3.bf16.msra.mxu1 %v3342_v49 }
 0x25e   :  { %2711 = vmatprep.subr.bf16.mxu1 %v3361_v5 }
 0x260   :  { %2700 = vmatmul.mubr.msk.bf16.vlgmr.msra.gmra.mrb[12].mxu0 %vm650_vm11, %v3338_v42 }
 0x32b   :  { %v2693_v24 = vpop.f32.mrb[12].mxu1 }
 0x32c   :  { %v697_v25 = vpop.f32.mrb[13].mxu1  ;;  %v777_v32 = vsel %vm649_vm12, %v2693_v24, -1e+30 }
 0x32d   :  { %v775_v26 = vsel %vm649_vm12, %v697_v25, -1e+30  ;;  %v2694_v27 = vpop.f32.mrb[14].mxu1  ;;  %v789_v35 = vsel %vm335_vm8, %v777_v32, -inf }
 0x32e   :  { %v700_v28 = vpop.f32.mrb[15].mxu1  ;;  %v783_v30 = vsel %vm335_vm8, %v775_v26, -inf  ;;  %v778_v36 = vsel %vm649_vm12, %v2694_v27, -1e+30 }
 0x32f   :  { %v776_v33 = vsel %vm649_vm12, %v700_v28, -1e+30  ;;  %784 = vmax.xlane.f32.xlu0 %v783_v30  ;;  %v792_v43 = vsel %vm335_vm8, %v778_v36, -inf }
 0x330   :  { %v786_v34 = vsel %vm335_vm8, %v776_v33, -inf }
 0x331   :  { %787 = vmax.xlane.f32.xlu1 %v786_v34 }
 0x333   :  { %790 = vmax.xlane.f32.xlu0 %v789_v35  ;;  %v2701_v37 = vpop.f32.mrb[12].mxu0 }
 0x334   :  { %v758_v38 = vpop.f32.mrb[13].mxu0  ;;  %v781_v46 = vsel %vm649_vm12, %v2701_v37, -1e+30 }
 0x335   :  { %v3402_v39 = vsel %vm649_vm12, %v758_v38, -1e+30  ;;  %v2702_v40 = vpop.f32.mrb[14].mxu0  ;;  %v801_v48 = vsel %vm335_vm8, %v781_v46, -inf }
 0x336   :  { %v761_v41 = vpop.f32.mrb[15].mxu0  ;;  %v795_v44 = vsel %vm335_vm8, %v3402_v39, -inf  ;;  %v782_v51 = vsel %vm649_vm12, %v2702_v40, -1e+30 }
 0x337   :  { %v780_v47 = vsel %vm649_vm12, %v761_v41, -1e+30  ;;  %793 = vmax.xlane.f32.xlu0 %v792_v43  ;;  %796 = vmax.xlane.f32.xlu1 %v795_v44  ;;  %v804_v53 = vsel %vm335_vm8, %v782_v51, -inf }
 0x338   :  { %v798_v50 = vsel %vm335_vm8, %v780_v47, -inf }
 0x33b   :  { %802 = vmax.xlane.f32.xlu1 %v801_v48  ;;  %799 = vmax.xlane.f32.xlu0 %v798_v50 }
 0x33f   :  { %805 = vmax.xlane.f32.xlu0 %v804_v53 }
 0x3bc   :  { %v785_v54 = vpop.xlane.xlu0 %784 }
 0x3bd   :  { %v807_v56 = vsub.f32 %v775_v26, %v785_v54 }
 0x3be   :  { %v788_v55 = vpop.xlane.xlu1 %787 }
 0x3bf   :  { %v808_v57 = vsub.f32 %v776_v33, %v788_v55  ;;  %v815_v61 = vmul.f32 1.442695, %v807_v56 }
 0x3c0   :  { %v791_v58 = vpop.xlane.xlu0 %790 }
 0x3c1   :  { %v817_v59 = vmul.f32 1.442695, %v808_v57  ;;  %v809_v60 = vsub.f32 %v777_v32, %v791_v58 }
 0x3c3   :  { %2943 = vpow2.f32 %v817_v59  ;;  %v819_v62 = vmul.f32 1.442695, %v809_v60 }
 0x3c4   :  { %v794_v2 = vpop.xlane.xlu0 %793  ;;  %v797_v28 = vpop.xlane.xlu1 %796 }
 0x3c5   :  { %2945 = vpow2.f32 %v819_v62  ;;  %v810_v4 = vsub.f32 %v778_v36, %v794_v2  ;;  %v811_v33 = vsub.f32 %v3402_v39, %v797_v28 }
 0x3c6   :  { %2947 = vpow2.f32 %v815_v61 }
 0x3c7   :  { %v821_v6 = vmul.f32 1.442695, %v810_v4  ;;  %v823_v35 = vmul.f32 1.442695, %v811_v33 }
 0x3c8   :  { %v800_v7 = vpop.xlane.xlu0 %799  ;;  %v803_v30 = vpop.xlane.xlu1 %802 }
 0x3c9   :  { %2949 = vpow2.f32 %v821_v6  ;;  %v812_v12 = vsub.f32 %v780_v47, %v800_v7  ;;  %v813_v32 = vsub.f32 %v781_v46, %v803_v30 }
 0x3cb   :  { %v825_v1 = vmul.f32 1.442695, %v812_v12  ;;  %v827_v34 = vmul.f32 1.442695, %v813_v32 }
 0x3cc   :  { %v806_v14 = vpop.xlane.xlu0 %805 }
 0x3cd   :  { %v3416_v15 = vpop.eup %2943  ;;  %v814_v16 = vsub.f32 %v782_v51, %v806_v14 }
 0x3ce   :  { %v834_v9 = vsel %vm335_vm8, %v3416_v15, 0.0 }
 0x3cf   :  { %v3420_v17 = vpop.eup %2945  ;;  %v829_v0 = vmul.f32 1.442695, %v814_v16  ;;  %835 = vadd.xlane.f32.xlu0 %v834_v9 }
 0x3d0   :  { %v837_v18 = vsel %vm335_vm8, %v3420_v17, 0.0  ;;  %v2948_v19 = vpop.eup %2947 }
 0x3d1   :  { %2951 = vpow2.f32 %v829_v0  ;;  %838 = vadd.xlane.f32.xlu1 %v837_v18  ;;  %v831_v22 = vsel %vm335_vm8, %v2948_v19, 0.0 }
 0x3d2   :  { %2953 = vpow2.f32 %v825_v1 }
 0x3d3   :  { %v2950_v20 = vpop.eup %2949  ;;  %2955 = vpow2.f32 %v827_v34 }
 0x3d4   :  { %v840_v23 = vsel %vm335_vm8, %v2950_v20, 0.0  ;;  %2957 = vpow2.f32 %v823_v35 }
 0x3d5   :  { %832 = vadd.xlane.f32.xlu1 %v831_v22  ;;  %841 = vadd.xlane.f32.xlu0 %v840_v23 }
 0x3db   :  { %v3426_v24 = vpop.eup %2951 }
 0x3dc   :  { %v852_v25 = vsel %vm335_vm8, %v3426_v24, 0.0  ;;  %v3430_v26 = vpop.eup %2953 }
 0x3dd   :  { %853 = vadd.xlane.f32.xlu0 %v852_v25  ;;  %v846_v27 = vsel %vm335_vm8, %v3430_v26, 0.0  ;;  %v2956_v36 = vpop.eup %2955 }
 0x3de   :  { %v849_v37 = vsel %vm335_vm8, %v2956_v36, 0.0  ;;  %v2958_v38 = vpop.eup %2957 }
 0x3df   :  { %v843_v40 = vsel %vm335_vm8, %v2958_v38, 0.0 }
 0x3e1   :  { %847 = vadd.xlane.f32.xlu0 %v846_v27 }
 0x3e6   :  { %993 = vrot.lane.b32.xlu1 %v3353_v3, %s3123_s5 }
 0x3f7   :  { %995 = vrot.lane.b32.xlu0 %v3351_v63, %s3123_s5 }
 0x3fb   :  { %1068 = vrot.lane.b32.xlu0 %v3365_v8, %s3123_s5 }
 0x3ff   :  { %1062 = vrot.lane.b32.xlu0 %v3338_v42, %s3123_s5 }
 0x40a   :  { %850 = vadd.xlane.f32.xlu1 %v849_v37 }
 0x40e   :  { %844 = vadd.xlane.f32.xlu1 %v843_v40 }
 0x41f   :  { %1066 = vrot.lane.b32.xlu1 %v3367_v10, %s3123_s5 }
 0x423   :  { %987 = vrot.lane.b32.xlu1 %v3331_v31, %s3123_s5 }
 0x427   :  { %989 = vrot.lane.b32.xlu1 %v3329_v29, %s3123_s5 }
 0x42b   :  { %1060 = vrot.lane.b32.xlu1 %v3340_v45, %s3123_s5 }
 0x45c   :  { %v836_v39 = vpop.xlane.xlu0 %835 }
 0x45d   :  { %2959 = vrcp.f32 %v836_v39 }
 0x45e   :  { %v839_v41 = vpop.xlane.xlu1 %838 }
 0x45f   :  { %2961 = vrcp.f32 %v839_v41 }
 0x462   :  { %v833_v43 = vpop.xlane.xlu1 %832  ;;  %v842_v44 = vpop.xlane.xlu0 %841 }
 0x463   :  { %2963 = vrcp.f32 %v833_v43 }
 0x464   :  { %2965 = vrcp.f32 %v842_v44 }
 0x466   :  { %v994_v46 = vpop.permute.xlu1 %993 }
 0x467   :  { %2835 = vmatprep.subr.msk.bf16.mxu0 %vm650_vm11, %v994_v46  ;;  %v1004_v47 = vsel %vm650_vm11, %v994_v46, 0  ;;  %v2960_v50 = vpop.eup %2959 }
 0x468   :  { %2720 = vmatpush3.bf16.xpose.msra.mxu0 %v1004_v47  ;;  %v864_v57 = vmul.f32 %v2960_v50, %v3416_v15 }
 0x469   :  { %v2962_v51 = vpop.eup %2961 }
 0x46a   :  { %v854_v48 = vpop.xlane.xlu0 %853  ;;  %v865_v58 = vmul.f32 %v2962_v51, %v3420_v17 }
 0x46d   :  { %v2964_v53 = vpop.eup %2963 }
 0x46e   :  { %v2966_v54 = vpop.eup %2965  ;;  %v848_v55 = vpop.xlane.xlu0 %847  ;;  %v863_v56 = vmul.f32 %v2964_v53, %v2948_v19 }
 0x46f   :  { %v866_v59 = vmul.f32 %v2966_v54, %v2950_v20 }
 0x470   :  { %v871_v60 = vpack.c.bf16 %v864_v57, %v863_v56 }
 0x471   :  { %v872_v61 = vpack.c.bf16 %v866_v59, %v865_v58 }
 0x472   :  { %2707 = vmatprep.mubr.msk.bf16.mxu1 %vm335_vm8, %v871_v60  ;;  %v996_v62 = vpop.permute.xlu0 %995 }
 0x473   :  { %v1007_v2 = vsel %vm650_vm11, %v996_v62, 0  ;;  %2708 = vmatmul.mubr.msk.bf16.vlgmr.msra.gmra.mrb[16].mxu1 %vm335_vm8, %v872_v61  ;;  %2836 = vmatprep.subr.msk.bf16.mxu0 %vm650_vm11, %v996_v62 }
 0x474   :  { %2712 = vmatpush3.bf16.msra.mxu1 %v3361_v5  ;;  %2722 = vmatpush3.bf16.xpose.msra.mxu0 %v1007_v2 }
 0x475   :  { %2713 = vmatprep.subr.bf16.mxu1 %v3355_v13 }
 0x476   :  { %v1069_v27 = vpop.permute.xlu0 %1068 }
 0x478   :  { %2714 = vmatpush3.bf16.msra.mxu1 %v3355_v13 }
 0x497   :  { %v851_v4 = vpop.xlane.xlu1 %850 }
 0x498   :  { %2967 = vrcp.f32 %v851_v4 }
 0x499   :  { %2969 = vrcp.f32 %v848_v55 }
 0x49a   :  { %2971 = vrcp.f32 %v854_v48 }
 0x49b   :  { %v845_v6 = vpop.xlane.xlu1 %844 }
 0x49c   :  { %2973 = vrcp.f32 %v845_v6 }
 0x49f   :  { %v1067_v7 = vpop.permute.xlu1 %1066 }
 0x4a0   :  { %2837 = vmatprep.subr.msk.bf16.mxu1 %vm650_vm11, %v1067_v7  ;;  %v1077_v25 = vsel %vm650_vm11, %v1067_v7, 0 }
 0x4a2   :  { %v2968_v12 = vpop.eup %2967 }
 0x4a3   :  { %v988_v14 = vpop.permute.xlu1 %987  ;;  %v2970_v15 = vpop.eup %2969  ;;  %v869_v17 = vmul.f32 %v2968_v12, %v2956_v36 }
 0x4a4   :  { %2723 = vmatprep.mubr.msk.bf16.mxu0 %vm650_vm11, %v988_v14  ;;  %v2972_v16 = vpop.eup %2971  ;;  %v868_v18 = vmul.f32 %v2970_v15, %v3430_v26  ;;  %v1080_v26 = vsel %vm650_vm11, %v1069_v27, 0 }
 0x4a5   :  { %v870_v19 = vmul.f32 %v2972_v16, %v3426_v24  ;;  %v1063_v24 = vpop.permute.xlu0 %1062 }
 0x4a6   :  { %v2974_v9 = vpop.eup %2973 }
 0x4a7   :  { %v990_v1 = vpop.permute.xlu1 %989  ;;  %v867_v0 = vmul.f32 %v2974_v9, %v2958_v38  ;;  %v874_v22 = vpack.c.bf16 %v870_v19, %v869_v17 }
 0x4a8   :  { %2724 = vmatmul.mubr.msk.bf16.vlgmr.msra.gmra.mrb[16].mxu0 %vm650_vm11, %v990_v1 }
 0x4a9   :  { %v873_v20 = vpack.c.bf16 %v868_v18, %v867_v0 }
 0x4ab   :  { %v1061_v23 = vpop.permute.xlu1 %1060  ;;  %2715 = vmatprep.mubr.msk.bf16.mxu1 %vm335_vm8, %v873_v20 }
 0x4ac   :  { %2716 = vmatmul.mubr.msk.bf16.vlgmr.msra.gmra.mrb[20].mxu1 %vm335_vm8, %v874_v22 }
 0x4ad   :  { %2728 = vmatpush3.bf16.xpose.msra.mxu1 %v1077_v25  ;;  %2731 = vmatprep.mubr.msk.bf16.mxu1 %vm650_vm11, %v1061_v23 }
 0x4ae   :  { %2838 = vmatprep.subr.msk.bf16.mxu1 %vm650_vm11, %v1069_v27 }
 0x4b5   :  { %2730 = vmatpush3.bf16.xpose.msra.mxu1 %v1080_v26 }
 0x4bc   :  { %2732 = vmatmul.mubr.msk.bf16.vlgmr.msra.gmra.mrb[24].mxu1 %vm650_vm11, %v1063_v24 }
 0x546   :  { %v3476_v28 = vpop.f32.mrb[16].mxu1 }
 0x547   :  { %v3478_v30 = vpop.f32.mrb[17].mxu1 }
 0x548   :  { %v3480_v32 = vpop.f32.mrb[18].mxu1 }
 0x549   :  { %v3482_v33 = vpop.f32.mrb[19].mxu1 }
 0x57b   :  { %v2725_v34 = vpop.f32.mrb[16].mxu0 }
 0x57c   :  { %v1043_v35 = vpop.f32.mrb[17].mxu0  ;;  %v1133_v46 = vsel %vm649_vm12, %v2725_v34, -1e+30 }
 0x57d   :  { %v1131_v36 = vsel %vm649_vm12, %v1043_v35, -1e+30  ;;  %v2726_v37 = vpop.f32.mrb[18].mxu0  ;;  %v1145_v50 = vsel %vm335_vm8, %v1133_v46, -inf }
 0x57e   :  { %v1046_v38 = vpop.f32.mrb[19].mxu0  ;;  %v1139_v40 = vsel %vm335_vm8, %v1131_v36, -inf  ;;  %v1134_v51 = vsel %vm649_vm12, %v2726_v37, -1e+30 }
 0x57f   :  { %v1132_v39 = vsel %vm649_vm12, %v1046_v38, -1e+30  ;;  %v3489_v41 = vpop.f32.mrb[20].mxu1  ;;  %1140 = vmax.xlane.f32.xlu1 %v1139_v40  ;;  %v1148_v53 = vsel %vm335_vm8, %v1134_v51, -inf }
 0x580   :  { %v3491_v43 = vpop.f32.mrb[21].mxu1  ;;  %v1142_v44 = vsel %vm335_vm8, %v1132_v39, -inf }
 0x581   :  { %v3496_v47 = vpop.f32.mrb[22].mxu1  ;;  %1143 = vmax.xlane.f32.xlu0 %v1142_v44 }
 0x582   :  { %v3498_v48 = vpop.f32.mrb[23].mxu1 }
 0x585   :  { %1146 = vmax.xlane.f32.xlu0 %v1145_v50 }
 0x589   :  { %1149 = vmax.xlane.f32.xlu0 %v1148_v53 }
 0x58f   :  { %v2733_v54 = vpop.f32.mrb[24].mxu1 }
 0x590   :  { %v1116_v55 = vpop.f32.mrb[25].mxu1  ;;  %v1137_v60 = vsel %vm649_vm12, %v2733_v54, -1e+30 }
 0x591   :  { %v1135_v56 = vsel %vm649_vm12, %v1116_v55, -1e+30  ;;  %v2734_v57 = vpop.f32.mrb[26].mxu1  ;;  %v1157_v4 = vsel %vm335_vm8, %v1137_v60, -inf }
 0x592   :  { %v1119_v58 = vpop.f32.mrb[27].mxu1  ;;  %v1151_v59 = vsel %vm335_vm8, %v1135_v56, -inf  ;;  %v1138_v2 = vsel %vm649_vm12, %v2734_v57, -1e+30 }
 0x593   :  { %v1136_v61 = vsel %vm649_vm12, %v1119_v58, -1e+30  ;;  %1152 = vmax.xlane.f32.xlu1 %v1151_v59  ;;  %v1160_v6 = vsel %vm335_vm8, %v1138_v2, -inf }
 0x594   :  { %v1154_v62 = vsel %vm335_vm8, %v1136_v61, -inf }
 0x595   :  { %1155 = vmax.xlane.f32.xlu0 %v1154_v62 }
 0x597   :  { %1158 = vmax.xlane.f32.xlu1 %v1157_v4 }
 0x599   :  { %1161 = vmax.xlane.f32.xlu0 %v1160_v6 }
 0x60c   :  { %v1141_v7 = vpop.xlane.xlu1 %1140 }
 0x60d   :  { %v1163_v12 = vsub.f32 %v1131_v36, %v1141_v7 }
 0x60e   :  { %v1144_v14 = vpop.xlane.xlu0 %1143 }
 0x60f   :  { %v1171_v15 = vmul.f32 1.442695, %v1163_v12  ;;  %v1164_v16 = vsub.f32 %v1132_v39, %v1144_v14 }
 0x611   :  { %2975 = vpow2.f32 %v1171_v15  ;;  %v1173_v9 = vmul.f32 1.442695, %v1164_v16 }
 0x612   :  { %v1147_v17 = vpop.xlane.xlu0 %1146 }
 0x613   :  { %2977 = vpow2.f32 %v1173_v9  ;;  %v1165_v1 = vsub.f32 %v1133_v46, %v1147_v17 }
 0x615   :  { %v1175_v0 = vmul.f32 1.442695, %v1165_v1 }
 0x616   :  { %v1150_v18 = vpop.xlane.xlu0 %1149 }
 0x617   :  { %2979 = vpow2.f32 %v1175_v0  ;;  %v1166_v19 = vsub.f32 %v1134_v51, %v1150_v18 }
 0x619   :  { %v1177_v20 = vmul.f32 1.442695, %v1166_v19 }
 0x61b   :  { %v3516_v22 = vpop.eup %2975  ;;  %2981 = vpow2.f32 %v1177_v20 }
 0x61c   :  { %v1187_v23 = vsel %vm335_vm8, %v3516_v22, 0.0 }
 0x61d   :  { %v3520_v25 = vpop.eup %2977  ;;  %1188 = vadd.xlane.f32.xlu1 %v1187_v23 }
 0x61e   :  { %v1190_v27 = vsel %vm335_vm8, %v3520_v25, 0.0 }
 0x61f   :  { %1191 = vadd.xlane.f32.xlu0 %v1190_v27 }
 0x620   :  { %v1153_v38 = vpop.xlane.xlu1 %1152 }
 0x621   :  { %v3524_v26 = vpop.eup %2979  ;;  %v1167_v53 = vsub.f32 %v1135_v56, %v1153_v38 }
 0x622   :  { %v1193_v24 = vsel %vm335_vm8, %v3524_v26, 0.0  ;;  %v1156_v36 = vpop.xlane.xlu0 %1155 }
 0x623   :  { %1194 = vadd.xlane.f32.xlu1 %v1193_v24  ;;  %v1168_v39 = vsub.f32 %v1136_v61, %v1156_v36  ;;  %v1179_v55 = vmul.f32 1.442695, %v1167_v53 }
 0x624   :  { %v1159_v46 = vpop.xlane.xlu1 %1158 }
 0x625   :  { %v3528_v34 = vpop.eup %2981  ;;  %v1181_v50 = vmul.f32 1.442695, %v1168_v39  ;;  %v1169_v51 = vsub.f32 %v1137_v60, %v1159_v46 }
 0x626   :  { %v1196_v35 = vsel %vm335_vm8, %v3528_v34, 0.0  ;;  %v1162_v37 = vpop.xlane.xlu0 %1161 }
 0x627   :  { %1197 = vadd.xlane.f32.xlu0 %v1196_v35  ;;  %v1170_v40 = vsub.f32 %v1138_v2, %v1162_v37  ;;  %v1183_v54 = vmul.f32 1.442695, %v1169_v51 }
 0x629   :  { %v1185_v44 = vmul.f32 1.442695, %v1170_v40 }
 0x62b   :  { %2983 = vpow2.f32 %v1185_v44 }
 0x62c   :  { %2985 = vpow2.f32 %v1181_v50 }
 0x62d   :  { %2987 = vpow2.f32 %v1183_v54 }
 0x62e   :  { %2989 = vpow2.f32 %v1179_v55 }
 0x634   :  { %1233 = vrot.lane.b32.xlu1 %v3349_v52, %s3123_s5 }
 0x635   :  { %v3542_v57 = vpop.eup %2983 }
 0x636   :  { %v1208_v58 = vsel %vm335_vm8, %v3542_v57, 0.0  ;;  %v3546_v59 = vpop.eup %2985 }
 0x637   :  { %v1202_v61 = vsel %vm335_vm8, %v3546_v59, 0.0  ;;  %v3550_v62 = vpop.eup %2987 }
 0x638   :  { %1296 = vrot.lane.b32.xlu1 %v3361_v5, %s3123_s5  ;;  %v1205_v56 = vsel %vm335_vm8, %v3550_v62, 0.0  ;;  %v3554_v60 = vpop.eup %2989 }
 0x639   :  { %v1199_v2 = vsel %vm335_vm8, %v3554_v60, 0.0 }
 0x63c   :  { %1298 = vrot.lane.b32.xlu1 %v3355_v13, %s3123_s5 }
 0x63d   :  { %1235 = vrot.lane.b32.xlu0 %v3342_v49, %s3123_s5 }
 0x640   :  { %1361 = vrot.lane.b32.xlu1 %v3353_v3, %s3124_s26 }
 0x65c   :  { %1209 = vadd.xlane.f32.xlu0 %v1208_v58 }
 0x660   :  { %1203 = vadd.xlane.f32.xlu0 %v1202_v61 }
 0x664   :  { %1206 = vadd.xlane.f32.xlu1 %v1205_v56 }
 0x668   :  { %1200 = vadd.xlane.f32.xlu1 %v1199_v2 }
 0x676   :  { %1363 = vrot.lane.b32.xlu0 %v3351_v63, %s3124_s26 }
 0x679   :  { %1430 = vrot.lane.b32.xlu1 %v3367_v10, %s3124_s26 }
 0x67a   :  { %1357 = vrot.lane.b32.xlu0 %v3331_v31, %s3124_s26 }
 0x67d   :  { %1359 = vrot.lane.b32.xlu1 %v3329_v29, %s3124_s26 }
 0x67e   :  { %1432 = vrot.lane.b32.xlu0 %v3365_v8, %s3124_s26 }
 0x681   :  { %1426 = vrot.lane.b32.xlu1 %v3340_v45, %s3124_s26 }
 0x682   :  { %1428 = vrot.lane.b32.xlu0 %v3338_v42, %s3124_s26 }
 0x6aa   :  { %v1189_v4 = vpop.xlane.xlu1 %1188 }
 0x6ab   :  { %2991 = vrcp.f32 %v1189_v4 }
 0x6ac   :  { %v1192_v6 = vpop.xlane.xlu0 %1191 }
 0x6ad   :  { %2993 = vrcp.f32 %v1192_v6 }
 0x6b0   :  { %v1195_v7 = vpop.xlane.xlu1 %1194 }
 0x6b1   :  { %2995 = vrcp.f32 %v1195_v7 }
 0x6b4   :  { %v1234_v12 = vpop.permute.xlu1 %1233  ;;  %v1198_v14 = vpop.xlane.xlu0 %1197 }
 0x6b5   :  { %v2992_v15 = vpop.eup %2991  ;;  %2997 = vrcp.f32 %v1198_v14  ;;  %2735 = vmatprep.subr.bf16.mxu0 %v1234_v12 }
 0x6b6   :  { %2736 = vmatpush3.bf16.msra.mxu0 %v1234_v12  ;;  %v1219_v1 = vmul.f32 %v2992_v15, %v3516_v22 }
 0x6b7   :  { %v2994_v16 = vpop.eup %2993 }
 0x6b8   :  { %v1297_v9 = vpop.permute.xlu1 %1296  ;;  %v1236_v17 = vpop.permute.xlu0 %1235  ;;  %v1220_v0 = vmul.f32 %v2994_v16, %v3520_v25 }
 0x6b9   :  { %2737 = vmatprep.subr.bf16.mxu0 %v1236_v17  ;;  %2743 = vmatprep.subr.bf16.mxu1 %v1297_v9 }
 0x6ba   :  { %2738 = vmatpush3.bf16.msra.mxu0 %v1236_v17  ;;  %2744 = vmatpush3.bf16.msra.mxu1 %v1297_v9  ;;  %v1227_v18 = vpack.c.bf16 %v1220_v0, %v1219_v1 }
 0x6bb   :  { %v2996_v20 = vpop.eup %2995 }
 0x6bc   :  { %v1299_v19 = vpop.permute.xlu1 %1298  ;;  %2739 = vmatprep.mubr.msk.bf16.mxu0 %vm335_vm8, %v1227_v18  ;;  %v1221_v27 = vmul.f32 %v2996_v20, %v3524_v26 }
 0x6bd   :  { %2745 = vmatprep.subr.bf16.mxu1 %v1299_v19 }
 0x6be   :  { %2746 = vmatpush3.bf16.msra.mxu1 %v1299_v19 }
 0x6bf   :  { %v2998_v23 = vpop.eup %2997 }
 0x6c0   :  { %v1222_v24 = vmul.f32 %v2998_v23, %v3528_v34  ;;  %v1362_v35 = vpop.permute.xlu1 %1361 }
 0x6c1   :  { %2839 = vmatprep.subr.msk.bf16.mxu0 %vm650_vm11, %v1362_v35  ;;  %v1372_v25 = vsel %vm650_vm11, %v1362_v35, 0 }
 0x6c2   :  { %v1228_v22 = vpack.c.bf16 %v1222_v24, %v1221_v27 }
 0x6c4   :  { %2740 = vmatmul.mubr.msk.bf16.vlgmr.msra.gmra.mrb[20].mxu0 %vm335_vm8, %v1228_v22 }
 0x6c5   :  { %2752 = vmatpush3.bf16.xpose.msra.mxu0 %v1372_v25 }
 0x6e9   :  { %v1210_v36 = vpop.xlane.xlu0 %1209 }
 0x6ed   :  { %v1204_v37 = vpop.xlane.xlu0 %1203 }
 0x6f1   :  { %v1207_v38 = vpop.xlane.xlu1 %1206  ;;  %v1364_v40 = vpop.permute.xlu0 %1363 }
 0x6f2   :  { %v1375_v39 = vsel %vm650_vm11, %v1364_v40, 0  ;;  %2840 = vmatprep.subr.msk.bf16.mxu0 %vm650_vm11, %v1364_v40  ;;  %2999 = vrcp.f32 %v1207_v38 }
 0x6f3   :  { %2754 = vmatpush3.bf16.xpose.msra.mxu0 %v1375_v39  ;;  %3001 = vrcp.f32 %v1204_v37 }
 0x6f4   :  { %3003 = vrcp.f32 %v1210_v36 }
 0x6f5   :  { %v1201_v26 = vpop.xlane.xlu1 %1200  ;;  %v1358_v34 = vpop.permute.xlu0 %1357 }
 0x6f6   :  { %3005 = vrcp.f32 %v1201_v26  ;;  %2755 = vmatprep.mubr.msk.bf16.mxu0 %vm650_vm11, %v1358_v34 }
 0x6f9   :  { %v1431_v44 = vpop.permute.xlu1 %1430  ;;  %v1433_v12 = vpop.permute.xlu0 %1432 }
 0x6fa   :  { %2841 = vmatprep.subr.msk.bf16.mxu1 %vm650_vm11, %v1431_v44  ;;  %v1441_v6 = vsel %vm650_vm11, %v1431_v44, 0 }
 0x6fc   :  { %v3000_v46 = vpop.eup %2999 }
 0x6fd   :  { %v1360_v50 = vpop.permute.xlu1 %1359  ;;  %v3002_v51 = vpop.eup %3001  ;;  %v1225_v55 = vmul.f32 %v3000_v46, %v3550_v62  ;;  %v1444_v62 = vsel %vm650_vm11, %v1433_v12, 0 }
 0x6fe   :  { %2756 = vmatmul.mubr.msk.bf16.vlgmr.msra.gmra.mrb[24].mxu0 %vm650_vm11, %v1360_v50  ;;  %v3004_v53 = vpop.eup %3003  ;;  %v1224_v61 = vmul.f32 %v3002_v51, %v3546_v59  ;;  %v1429_v59 = vpop.permute.xlu0 %1428 }
 0x6ff   :  { %v1226_v56 = vmul.f32 %v3004_v53, %v3542_v57 }
 0x700   :  { %v3006_v54 = vpop.eup %3005 }
 0x701   :  { %v1223_v58 = vmul.f32 %v3006_v54, %v3554_v60  ;;  %v1230_v4 = vpack.c.bf16 %v1226_v56, %v1225_v55  ;;  %v1427_v7 = vpop.permute.xlu1 %1426 }
 0x703   :  { %v1229_v2 = vpack.c.bf16 %v1224_v61, %v1223_v58 }
 0x705   :  { %2747 = vmatprep.mubr.msk.bf16.mxu1 %vm335_vm8, %v1229_v2 }
 0x706   :  { %2748 = vmatmul.mubr.msk.bf16.vlgmr.msra.gmra.mrb[28].mxu1 %vm335_vm8, %v1230_v4 }
 0x707   :  { %2760 = vmatpush3.bf16.xpose.msra.mxu1 %v1441_v6  ;;  %2763 = vmatprep.mubr.msk.bf16.mxu1 %vm650_vm11, %v1427_v7 }
 0x708   :  { %2842 = vmatprep.subr.msk.bf16.mxu1 %vm650_vm11, %v1433_v12 }
 0x70f   :  { %2762 = vmatpush3.bf16.xpose.msra.mxu1 %v1444_v62 }
 0x716   :  { %2764 = vmatmul.mubr.msk.bf16.vlgmr.msra.gmra.mrb[32].mxu1 %vm650_vm11, %v1429_v59 }
 0x797   :  { %v3596_v57 = vpop.f32.mrb[20].mxu0 }
 0x798   :  { %v3598_v60 = vpop.f32.mrb[21].mxu0 }
 0x799   :  { %v3600_v14 = vpop.f32.mrb[22].mxu0 }
 0x79a   :  { %v2870_v15 = vpack.i.bf16 %v3600_v14, %v3596_v57  ;;  %v3604_v16 = vpop.f32.mrb[23].mxu0 }
 0x79b   :  { %v2865_v9 = vpack.i.bf16 %v3604_v16, %v3598_v60 }
 0x7d1   :  { %v2757_v17 = vpop.f32.mrb[24].mxu0 }
 0x7d2   :  { %v1411_v1 = vpop.f32.mrb[25].mxu0  ;;  %v1497_v24 = vsel %vm649_vm12, %v2757_v17, -1e+30 }
 0x7d3   :  { %v1495_v0 = vsel %vm649_vm12, %v1411_v1, -1e+30  ;;  %v2758_v18 = vpop.f32.mrb[26].mxu0  ;;  %v1509_v25 = vsel %vm335_vm8, %v1497_v24, -inf }
 0x7d4   :  { %v1414_v19 = vpop.f32.mrb[27].mxu0  ;;  %v1503_v20 = vsel %vm335_vm8, %v1495_v0, -inf  ;;  %v1498_v36 = vsel %vm649_vm12, %v2758_v18, -1e+30 }
 0x7d5   :  { %v1496_v23 = vsel %vm649_vm12, %v1414_v19, -1e+30  ;;  %1504 = vmax.xlane.f32.xlu1 %v1503_v20  ;;  %v1512_v26 = vsel %vm335_vm8, %v1498_v36, -inf }
 0x7d6   :  { %v1506_v27 = vsel %vm335_vm8, %v1496_v23, -inf }
 0x7d7   :  { %1507 = vmax.xlane.f32.xlu0 %v1506_v27 }
 0x7d9   :  { %v3616_v35 = vpop.f32.mrb[28].mxu1 }
 0x7da   :  { %v3618_v22 = vpop.f32.mrb[29].mxu1 }
 0x7db   :  { %v3623_v37 = vpop.f32.mrb[30].mxu1  ;;  %1510 = vmax.xlane.f32.xlu0 %v1509_v25 }
 0x7dc   :  { %v2900_v38 = vpack.i.bf16 %v3623_v37, %v3616_v35  ;;  %v3627_v40 = vpop.f32.mrb[31].mxu1 }
 0x7dd   :  { %v2895_v39 = vpack.i.bf16 %v3627_v40, %v3618_v22 }
 0x7df   :  { %1513 = vmax.xlane.f32.xlu0 %v1512_v26 }
 0x7e9   :  { %v2765_v34 = vpop.f32.mrb[32].mxu1 }
 0x7ea   :  { %v1480_v44 = vpop.f32.mrb[33].mxu1  ;;  %v1501_v54 = vsel %vm649_vm12, %v2765_v34, -1e+30 }
 0x7eb   :  { %v1499_v46 = vsel %vm649_vm12, %v1480_v44, -1e+30  ;;  %v2766_v50 = vpop.f32.mrb[34].mxu1  ;;  %v1521_v56 = vsel %vm335_vm8, %v1501_v54, -inf }
 0x7ec   :  { %v1483_v51 = vpop.f32.mrb[35].mxu1  ;;  %v1515_v53 = vsel %vm335_vm8, %v1499_v46, -inf  ;;  %v1502_v61 = vsel %vm649_vm12, %v2766_v50, -1e+30 }
 0x7ed   :  { %v1500_v55 = vsel %vm649_vm12, %v1483_v51, -1e+30  ;;  %1516 = vmax.xlane.f32.xlu1 %v1515_v53  ;;  %v1524_v2 = vsel %vm335_vm8, %v1502_v61, -inf }
 0x7ee   :  { %v1518_v58 = vsel %vm335_vm8, %v1500_v55, -inf }
 0x7ef   :  { %1519 = vmax.xlane.f32.xlu0 %v1518_v58 }
 0x7f1   :  { %1522 = vmax.xlane.f32.xlu1 %v1521_v56 }
 0x7f3   :  { %1525 = vmax.xlane.f32.xlu0 %v1524_v2 }
 0x862   :  { %v1505_v4 = vpop.xlane.xlu1 %1504 }
 0x863   :  { %v1527_v6 = vsub.f32 %v1495_v0, %v1505_v4 }
 0x864   :  { %v1508_v7 = vpop.xlane.xlu0 %1507 }
 0x865   :  { %v1535_v12 = vmul.f32 1.442695, %v1527_v6  ;;  %v1528_v62 = vsub.f32 %v1496_v23, %v1508_v7 }
 0x867   :  { %3007 = vpow2.f32 %v1535_v12  ;;  %v1537_v59 = vmul.f32 1.442695, %v1528_v62 }
 0x868   :  { %v1511_v17 = vpop.xlane.xlu0 %1510 }
 0x869   :  { %3009 = vpow2.f32 %v1537_v59  ;;  %v1529_v1 = vsub.f32 %v1497_v24, %v1511_v17 }
 0x86b   :  { %v1539_v18 = vmul.f32 1.442695, %v1529_v1 }
 0x86c   :  { %v1514_v19 = vpop.xlane.xlu0 %1513 }
 0x86d   :  { %3011 = vpow2.f32 %v1539_v18  ;;  %v1530_v20 = vsub.f32 %v1498_v36, %v1514_v19 }
 0x86f   :  { %v1541_v27 = vmul.f32 1.442695, %v1530_v20 }
 0x871   :  { %v3644_v25 = vpop.eup %3007  ;;  %3013 = vpow2.f32 %v1541_v27 }
 0x872   :  { %v1551_v26 = vsel %vm335_vm8, %v3644_v25, 0.0 }
 0x873   :  { %v3648_v0 = vpop.eup %3009  ;;  %1552 = vadd.xlane.f32.xlu1 %v1551_v26 }
 0x874   :  { %v1554_v23 = vsel %vm335_vm8, %v3648_v0, 0.0 }
 0x875   :  { %1555 = vadd.xlane.f32.xlu0 %v1554_v23 }
 0x877   :  { %v3652_v34 = vpop.eup %3011 }
 0x878   :  { %v1557_v24 = vsel %vm335_vm8, %v3652_v34, 0.0 }
 0x879   :  { %1558 = vadd.xlane.f32.xlu1 %v1557_v24 }
 0x87a   :  { %v1517_v53 = vpop.xlane.xlu1 %1516 }
 0x87b   :  { %v3656_v36 = vpop.eup %3013  ;;  %v1531_v12 = vsub.f32 %v1499_v46, %v1517_v53 }
 0x87c   :  { %v1560_v44 = vsel %vm335_vm8, %v3656_v36, 0.0  ;;  %v1520_v50 = vpop.xlane.xlu0 %1519 }
 0x87d   :  { %1561 = vadd.xlane.f32.xlu0 %v1560_v44  ;;  %v1532_v56 = vsub.f32 %v1500_v55, %v1520_v50  ;;  %v1543_v59 = vmul.f32 1.442695, %v1531_v12 }
 0x87e   :  { %v1523_v4 = vpop.xlane.xlu1 %1522 }
 0x87f   :  { %v1545_v6 = vmul.f32 1.442695, %v1532_v56  ;;  %v1533_v7 = vsub.f32 %v1501_v54, %v1523_v4 }
 0x880   :  { %v1526_v51 = vpop.xlane.xlu0 %1525 }
 0x881   :  { %v1534_v58 = vsub.f32 %v1502_v61, %v1526_v51  ;;  %v1547_v62 = vmul.f32 1.442695, %v1533_v7 }
 0x883   :  { %v1549_v2 = vmul.f32 1.442695, %v1534_v58 }
 0x885   :  { %3015 = vpow2.f32 %v1549_v2 }
 0x886   :  { %3017 = vpow2.f32 %v1545_v6 }
 0x887   :  { %3019 = vpow2.f32 %v1547_v62 }
 0x888   :  { %3021 = vpow2.f32 %v1543_v59 }
 0x88a   :  { %1595 = vrot.lane.b32.xlu1 %v3349_v52, %s3124_s26 }
 0x88e   :  { %1656 = vrot.lane.b32.xlu1 %v3361_v5, %s3124_s26 }
 0x88f   :  { %v3670_v17 = vpop.eup %3015 }
 0x890   :  { %v3674_v1 = vpop.eup %3017 }
 0x891   :  { %v1566_v55 = vsel %vm335_vm8, %v3674_v1, 0.0  ;;  %v3678_v61 = vpop.eup %3019 }
 0x892   :  { %1658 = vrot.lane.b32.xlu1 %v3355_v13, %s3124_s26  ;;  %v1569_v46 = vsel %vm335_vm8, %v3678_v61, 0.0  ;;  %v3682_v54 = vpop.eup %3021 }
 0x893   :  { %1597 = vrot.lane.b32.xlu0 %v3342_v49, %s3124_s26  ;;  %v1563_v18 = vsel %vm335_vm8, %v3682_v54, 0.0 }
 0x896   :  { %1721 = vrot.lane.b32.xlu1 %v3353_v3, %s3125_s27  ;;  %v1572_v3 = vsel %vm335_vm8, %v3670_v17, 0.0 }
 0x8b2   :  { %1573 = vadd.xlane.f32.xlu0 %v1572_v3 }
 0x8b6   :  { %1567 = vadd.xlane.f32.xlu0 %v1566_v55 }
 0x8ba   :  { %1570 = vadd.xlane.f32.xlu1 %v1569_v46 }
 0x8be   :  { %1564 = vadd.xlane.f32.xlu1 %v1563_v18 }
 0x8cc   :  { %1723 = vrot.lane.b32.xlu0 %v3351_v63, %s3125_s27 }
 0x8cf   :  { %1790 = vrot.lane.b32.xlu1 %v3367_v10, %s3125_s27 }
 0x8d0   :  { %1717 = vrot.lane.b32.xlu0 %v3331_v31, %s3125_s27 }
 0x8d3   :  { %1719 = vrot.lane.b32.xlu1 %v3329_v29, %s3125_s27 }
 0x8d4   :  { %1792 = vrot.lane.b32.xlu0 %v3365_v8, %s3125_s27 }
 0x8d7   :  { %1786 = vrot.lane.b32.xlu1 %v3340_v45, %s3125_s27 }
 0x8d8   :  { %1788 = vrot.lane.b32.xlu0 %v3338_v42, %s3125_s27 }
 0x900   :  { %v1553_v19 = vpop.xlane.xlu1 %1552 }
 0x901   :  { %3023 = vrcp.f32 %v1553_v19 }
 0x902   :  { %v1556_v63 = vpop.xlane.xlu0 %1555 }
 0x903   :  { %3025 = vrcp.f32 %v1556_v63 }
 0x906   :  { %v1559_v10 = vpop.xlane.xlu1 %1558 }
 0x907   :  { %3027 = vrcp.f32 %v1559_v10 }
 0x90a   :  { %v1596_v20 = vpop.permute.xlu1 %1595  ;;  %v1562_v31 = vpop.xlane.xlu0 %1561 }
 0x90b   :  { %v3024_v27 = vpop.eup %3023  ;;  %3029 = vrcp.f32 %v1562_v31  ;;  %2767 = vmatprep.subr.bf16.mxu0 %v1596_v20 }
 0x90c   :  { %2768 = vmatpush3.bf16.msra.mxu0 %v1596_v20  ;;  %v1583_v45 = vmul.f32 %v3024_v27, %v3644_v25 }
 0x90d   :  { %v3026_v29 = vpop.eup %3025 }
 0x90e   :  { %v1657_v8 = vpop.permute.xlu1 %1656  ;;  %v1598_v26 = vpop.permute.xlu0 %1597  ;;  %v1584_v23 = vmul.f32 %v3026_v29, %v3648_v0 }
 0x90f   :  { %2769 = vmatprep.subr.bf16.mxu0 %v1598_v26  ;;  %2775 = vmatprep.subr.bf16.mxu1 %v1657_v8 }
 0x910   :  { %2770 = vmatpush3.bf16.msra.mxu0 %v1598_v26  ;;  %2776 = vmatpush3.bf16.msra.mxu1 %v1657_v8  ;;  %v1591_v42 = vpack.c.bf16 %v1584_v23, %v1583_v45 }
 0x911   :  { %v3028_v44 = vpop.eup %3027 }
 0x912   :  { %v1659_v24 = vpop.permute.xlu1 %1658  ;;  %2771 = vmatprep.mubr.msk.bf16.mxu0 %vm335_vm8, %v1591_v42  ;;  %v1585_v51 = vmul.f32 %v3028_v44, %v3652_v34 }
 0x913   :  { %2777 = vmatprep.subr.bf16.mxu1 %v1659_v24 }
 0x914   :  { %2778 = vmatpush3.bf16.msra.mxu1 %v1659_v24 }
 0x915   :  { %v3030_v50 = vpop.eup %3029 }
 0x916   :  { %v1586_v53 = vmul.f32 %v3030_v50, %v3656_v36  ;;  %v1722_v58 = vpop.permute.xlu1 %1721 }
 0x917   :  { %2843 = vmatprep.subr.msk.bf16.mxu0 %vm650_vm11, %v1722_v58  ;;  %v1732_v0 = vsel %vm650_vm11, %v1722_v58, 0 }
 0x918   :  { %v1592_v25 = vpack.c.bf16 %v1586_v53, %v1585_v51 }
 0x91a   :  { %2772 = vmatmul.mubr.msk.bf16.vlgmr.msra.gmra.mrb[28].mxu0 %vm335_vm8, %v1592_v25 }
 0x91b   :  { %2784 = vmatpush3.bf16.xpose.msra.mxu0 %v1732_v0 }
 0x93f   :  { %v1574_v56 = vpop.xlane.xlu0 %1573 }
 0x943   :  { %v1568_v2 = vpop.xlane.xlu0 %1567 }
 0x947   :  { %v1571_v4 = vpop.xlane.xlu1 %1570  ;;  %v1724_v6 = vpop.permute.xlu0 %1723 }
 0x948   :  { %v1735_v7 = vsel %vm650_vm11, %v1724_v6, 0  ;;  %2844 = vmatprep.subr.msk.bf16.mxu0 %vm650_vm11, %v1724_v6  ;;  %3031 = vrcp.f32 %v1571_v4 }
 0x949   :  { %2786 = vmatpush3.bf16.xpose.msra.mxu0 %v1735_v7  ;;  %3033 = vrcp.f32 %v1568_v2 }
 0x94a   :  { %3035 = vrcp.f32 %v1574_v56 }
 0x94b   :  { %v1565_v34 = vpop.xlane.xlu1 %1564  ;;  %v1718_v36 = vpop.permute.xlu0 %1717 }
 0x94c   :  { %3037 = vrcp.f32 %v1565_v34  ;;  %2787 = vmatprep.mubr.msk.bf16.mxu0 %vm650_vm11, %v1718_v36 }
 0x94f   :  { %v1791_v12 = vpop.permute.xlu1 %1790  ;;  %v1793_v8 = vpop.permute.xlu0 %1792 }
 0x950   :  { %2845 = vmatprep.subr.msk.bf16.mxu1 %vm650_vm11, %v1791_v12  ;;  %v1801_v27 = vsel %vm650_vm11, %v1791_v12, 0 }
 0x952   :  { %v3032_v62 = vpop.eup %3031 }
 0x953   :  { %v1720_v59 = vpop.permute.xlu1 %1719  ;;  %v3034_v3 = vpop.eup %3033  ;;  %v1589_v18 = vmul.f32 %v3032_v62, %v3678_v61  ;;  %v1804_v61 = vsel %vm650_vm11, %v1793_v8, 0 }
 0x954   :  { %2788 = vmatmul.mubr.msk.bf16.vlgmr.msra.gmra.mrb[32].mxu0 %vm650_vm11, %v1720_v59  ;;  %v3036_v55 = vpop.eup %3035  ;;  %v1588_v63 = vmul.f32 %v3034_v3, %v3674_v1  ;;  %v1789_v1 = vpop.permute.xlu0 %1788 }
 0x955   :  { %v1590_v10 = vmul.f32 %v3036_v55, %v3670_v17 }
 0x956   :  { %v3038_v46 = vpop.eup %3037 }
 0x957   :  { %v1587_v19 = vmul.f32 %v3038_v46, %v3682_v54  ;;  %v1594_v31 = vpack.c.bf16 %v1590_v10, %v1589_v18  ;;  %v1787_v29 = vpop.permute.xlu1 %1786 }
 0x959   :  { %v1593_v20 = vpack.c.bf16 %v1588_v63, %v1587_v19 }
 0x95b   :  { %2779 = vmatprep.mubr.msk.bf16.mxu1 %vm335_vm8, %v1593_v20 }
 0x95c   :  { %2780 = vmatmul.mubr.msk.bf16.vlgmr.msra.gmra.mrb[36].mxu1 %vm335_vm8, %v1594_v31 }
 0x95d   :  { %2792 = vmatpush3.bf16.xpose.msra.mxu1 %v1801_v27  ;;  %2795 = vmatprep.mubr.msk.bf16.mxu1 %vm650_vm11, %v1787_v29 }
 0x95e   :  { %2846 = vmatprep.subr.msk.bf16.mxu1 %vm650_vm11, %v1793_v8 }
 0x965   :  { %2794 = vmatpush3.bf16.xpose.msra.mxu1 %v1804_v61 }
 0x96c   :  { %2796 = vmatmul.mubr.msk.bf16.vlgmr.msra.gmra.mrb[40].mxu1 %vm650_vm11, %v1789_v1 }
 0x9ed   :  { %v3724_v17 = vpop.f32.mrb[28].mxu0 }
 0x9ee   :  { %v3726_v54 = vpop.f32.mrb[29].mxu0 }
 0x9ef   :  { %v3728_v26 = vpop.f32.mrb[30].mxu0 }
 0x9f0   :  { %v2880_v45 = vpack.i.bf16 %v3728_v26, %v3724_v17  ;;  %v3732_v23 = vpop.f32.mrb[31].mxu0 }
 0x9f1   :  { %v2875_v42 = vpack.i.bf16 %v3732_v23, %v3726_v54 }
 0xa27   :  { %v2789_v24 = vpop.f32.mrb[32].mxu0 }
 0xa28   :  { %v1771_v44 = vpop.f32.mrb[33].mxu0  ;;  %v1857_v56 = vsel %vm649_vm12, %v2789_v24, -1e+30 }
 0xa29   :  { %v1855_v50 = vsel %vm649_vm12, %v1771_v44, -1e+30  ;;  %v2790_v51 = vpop.f32.mrb[34].mxu0  ;;  %v1869_v4 = vsel %vm335_vm8, %v1857_v56, -inf }
 0xa2a   :  { %v1863_v53 = vsel %vm335_vm8, %v1855_v50, -inf  ;;  %v1774_v58 = vpop.f32.mrb[35].mxu0  ;;  %v1858_v7 = vsel %vm649_vm12, %v2790_v51, -1e+30 }
 0xa2b   :  { %v1856_v25 = vsel %vm649_vm12, %v1774_v58, -1e+30  ;;  %1864 = vmax.xlane.f32.xlu1 %v1863_v53  ;;  %v1872_v59 = vsel %vm335_vm8, %v1858_v7, -inf }
 0xa2c   :  { %v1866_v0 = vsel %vm335_vm8, %v1856_v25, -inf }
 0xa2d   :  { %1867 = vmax.xlane.f32.xlu0 %v1866_v0 }
 0xa2f   :  { %v3744_v2 = vpop.f32.mrb[36].mxu1 }
 0xa30   :  { %v3747_v6 = vpop.f32.mrb[37].mxu1 }
 0xa31   :  { %v3751_v34 = vpop.f32.mrb[38].mxu1  ;;  %1870 = vmax.xlane.f32.xlu0 %v1869_v4 }
 0xa32   :  { %v2910_v36 = vpack.i.bf16 %v3751_v34, %v3744_v2  ;;  %v3755_v12 = vpop.f32.mrb[39].mxu1 }
 0xa33   :  { %v2905_v62 = vpack.i.bf16 %v3755_v12, %v3747_v6 }
 0xa35   :  { %1873 = vmax.xlane.f32.xlu0 %v1872_v59 }
 0xa3f   :  { %v2797_v3 = vpop.f32.mrb[40].mxu1 }
 0xa40   :  { %v1840_v55 = vpop.f32.mrb[41].mxu1  ;;  %v1861_v10 = vsel %vm649_vm12, %v2797_v3, -1e+30 }
 0xa41   :  { %v1859_v46 = vsel %vm649_vm12, %v1840_v55, -1e+30  ;;  %v2798_v18 = vpop.f32.mrb[42].mxu1  ;;  %v1881_v29 = vsel %vm335_vm8, %v1861_v10, -inf }
 0xa42   :  { %v1875_v19 = vsel %vm335_vm8, %v1859_v46, -inf  ;;  %v1843_v63 = vpop.f32.mrb[43].mxu1  ;;  %v1862_v27 = vsel %vm649_vm12, %v2798_v18, -1e+30 }
 0xa43   :  { %v1860_v20 = vsel %vm649_vm12, %v1843_v63, -1e+30  ;;  %1876 = vmax.xlane.f32.xlu1 %v1875_v19  ;;  %v1884_v8 = vsel %vm335_vm8, %v1862_v27, -inf }
 0xa44   :  { %v1878_v31 = vsel %vm335_vm8, %v1860_v20, -inf }
 0xa45   :  { %1879 = vmax.xlane.f32.xlu0 %v1878_v31 }
 0xa47   :  { %1882 = vmax.xlane.f32.xlu1 %v1881_v29 }
 0xa49   :  { %1885 = vmax.xlane.f32.xlu0 %v1884_v8 }
 0xab8   :  { %v1865_v61 = vpop.xlane.xlu1 %1864 }
 0xab9   :  { %v1887_v1 = vsub.f32 %v1855_v50, %v1865_v61 }
 0xaba   :  { %v1868_v24 = vpop.xlane.xlu0 %1867 }
 0xabb   :  { %v1895_v44 = vmul.f32 1.442695, %v1887_v1  ;;  %v1888_v51 = vsub.f32 %v1856_v25, %v1868_v24 }
 0xabd   :  { %3039 = vpow2.f32 %v1895_v44  ;;  %v1897_v53 = vmul.f32 1.442695, %v1888_v51 }
 0xabe   :  { %v1871_v58 = vpop.xlane.xlu0 %1870 }
 0xabf   :  { %3041 = vpow2.f32 %v1897_v53  ;;  %v1889_v0 = vsub.f32 %v1857_v56, %v1871_v58 }
 0xac1   :  { %v1899_v4 = vmul.f32 1.442695, %v1889_v0 }
 0xac2   :  { %v1874_v11 = vpop.xlane.xlu0 %1873 }
 0xac3   :  { %3043 = vpow2.f32 %v1899_v4  ;;  %v1890_v59 = vsub.f32 %v1858_v7, %v1874_v11 }
 0xac5   :  { %v1901_v3 = vmul.f32 1.442695, %v1890_v59 }
 0xac7   :  { %v3040_v55 = vpop.eup %3039  ;;  %3045 = vpow2.f32 %v1901_v3 }
 0xac8   :  { %v1911_v18 = vsel %vm335_vm8, %v3040_v55, 0.0 }
 0xac9   :  { %v3042_v19 = vpop.eup %3041  ;;  %1912 = vadd.xlane.f32.xlu1 %v1911_v18 }
 0xaca   :  { %v1914_v50 = vsel %vm335_vm8, %v3042_v19, 0.0 }
 0xacb   :  { %1915 = vadd.xlane.f32.xlu0 %v1914_v50 }
 0xacd   :  { %v3774_v25 = vpop.eup %3043 }
 0xace   :  { %v1917_v63 = vsel %vm335_vm8, %v3774_v25, 0.0 }
 0xacf   :  { %1918 = vadd.xlane.f32.xlu1 %v1917_v63 }
 0xad0   :  { %v1877_v51 = vpop.xlane.xlu1 %1876 }
 0xad1   :  { %v3046_v56 = vpop.eup %3045  ;;  %v1891_v4 = vsub.f32 %v1859_v46, %v1877_v51 }
 0xad2   :  { %v1880_v31 = vpop.xlane.xlu0 %1879  ;;  %v1920_v7 = vsel %vm335_vm8, %v3046_v56, 0.0 }
 0xad3   :  { %1921 = vadd.xlane.f32.xlu0 %v1920_v7  ;;  %v1892_v29 = vsub.f32 %v1860_v20, %v1880_v31  ;;  %v1903_v59 = vmul.f32 1.442695, %v1891_v4 }
 0xad5   :  { %v1905_v1 = vmul.f32 1.442695, %v1892_v29 }
 0xad6   :  { %v1886_v8 = vpop.xlane.xlu0 %1885 }
 0xad7   :  { %v1894_v61 = vsub.f32 %v1862_v27, %v1886_v8  ;;  %v1883_v27 = vpop.xlane.xlu1 %1882 }
 0xad8   :  { %v1893_v0 = vsub.f32 %v1861_v10, %v1883_v27  ;;  %v2937_v27 = vld [vmem:[%s3915_s8] sm:$0xff]  }
 0xad9   :  { %v1909_v24 = vmul.f32 1.442695, %v1894_v61 }
 0xada   :  { %v1907_v11 = vmul.f32 1.442695, %v1893_v0  ;;  %v2938_v0 = vld [vmem:[%s3915_s8 + $0x8] sm:$0xff]  }
 0xadb   :  { %3047 = vpow2.f32 %v1909_v24 }
 0xadc   :  { %3049 = vpow2.f32 %v1905_v1 }
 0xadd   :  { %3051 = vpow2.f32 %v1907_v11 }
 0xade   :  { %3053 = vpow2.f32 %v1903_v59 }
 0xae0   :  { %1955 = vrot.lane.b32.xlu1 %v3349_v52, %s3125_s27 }
 0xae5   :  { %v3781_v44 = vpop.eup %3047 }
 0xae6   :  { %v1932_v53 = vsel %vm335_vm8, %v3781_v44, 0.0  ;;  %v3785_v58 = vpop.eup %3049 }
 0xae7   :  { %1933 = vadd.xlane.f32.xlu0 %v1932_v53  ;;  %v1926_v20 = vsel %vm335_vm8, %v3785_v58, 0.0  ;;  %v3052_v52 = vpop.eup %3051 }
 0xae8   :  { %v1929_v3 = vsel %vm335_vm8, %v3052_v52, 0.0  ;;  %v3054_v18 = vpop.eup %3053 }
 0xae9   :  { %v1923_v46 = vsel %vm335_vm8, %v3054_v18, 0.0 }
 0xaeb   :  { %1927 = vadd.xlane.f32.xlu0 %v1926_v20 }
 0xb01   :  { %1957 = vrot.lane.b32.xlu0 %v3342_v49, %s3125_s27 }
 0xb04   :  { %1930 = vadd.xlane.f32.xlu1 %v1929_v3 }
 0xb05   :  { %2871 = vrot.lane.b32.xlu0 %v2870_v15, %s3126_s28 }
 0xb08   :  { %1924 = vadd.xlane.f32.xlu1 %v1923_v46 }
 0xb09   :  { %2881 = vrot.lane.b32.xlu0 %v2880_v45, %s3127_s29 }
 0xb19   :  { %2016 = vrot.lane.b32.xlu1 %v3361_v5, %s3125_s27 }
 0xb1d   :  { %2018 = vrot.lane.b32.xlu1 %v3355_v13, %s3125_s27 }
 0xb21   :  { %2866 = vrot.lane.b32.xlu1 %v2865_v9, %s3126_s28 }
 0xb25   :  { %2876 = vrot.lane.b32.xlu1 %v2875_v42, %s3127_s29 }
 0xb56   :  { %v1913_v49 = vpop.xlane.xlu1 %1912 }
 0xb57   :  { %3055 = vrcp.f32 %v1913_v49 }
 0xb58   :  { %v1916_v57 = vpop.xlane.xlu0 %1915 }
 0xb59   :  { %3057 = vrcp.f32 %v1916_v57 }
 0xb5c   :  { %v1919_v14 = vpop.xlane.xlu1 %1918 }
 0xb60   :  { %v1956_v15 = vpop.permute.xlu1 %1955  ;;  %v1922_v60 = vpop.xlane.xlu0 %1921 }
 0xb61   :  { %v3056_v5 = vpop.eup %3055  ;;  %2799 = vmatprep.subr.bf16.mxu0 %v1956_v15  ;;  %3059 = vrcp.f32 %v1922_v60 }
 0xb62   :  { %2800 = vmatpush3.bf16.msra.mxu0 %v1956_v15  ;;  %v1943_v17 = vmul.f32 %v3056_v5, %v3040_v55  ;;  %3061 = vrcp.f32 %v1919_v14 }
 0xb63   :  { %v3058_v13 = vpop.eup %3057 }
 0xb64   :  { %v1944_v26 = vmul.f32 %v3058_v13, %v3042_v19 }
 0xb66   :  { %v1951_v45 = vpack.c.bf16 %v1944_v26, %v1943_v17 }
 0xb68   :  { %2803 = vmatprep.mubr.msk.bf16.mxu0 %vm335_vm8, %v1951_v45 }
 0xb6b   :  { %v3060_v9 = vpop.eup %3059 }
 0xb6c   :  { %v3062_v23 = vpop.eup %3061  ;;  %v1946_v42 = vmul.f32 %v3060_v9, %v3046_v56 }
 0xb6d   :  { %v1945_v50 = vmul.f32 %v3062_v23, %v3774_v25 }
 0xb6f   :  { %v1952_v63 = vpack.c.bf16 %v1946_v42, %v1945_v50 }
 0xb74   :  { %v1934_v16 = vpop.xlane.xlu0 %1933 }
 0xb78   :  { %v1928_v54 = vpop.xlane.xlu0 %1927 }
 0xb7c   :  { %v1958_v10 = vpop.permute.xlu0 %1957 }
 0xb7d   :  { %2801 = vmatprep.subr.bf16.mxu0 %v1958_v10 }
 0xb7e   :  { %2802 = vmatpush3.bf16.msra.mxu0 %v1958_v10 }
 0xb7f   :  { %2815 = vmatprep.subr.bf16.mxu0 %v2937_v27 }
 0xb80   :  { %v2872_v22 = vpop.permute.xlu0 %2871 }
 0xb81   :  { %2804 = vmatmul.mubr.msk.bf16.vlgmr.msra.gmra.mrb[36].mxu0 %vm335_vm8, %v1952_v63  ;;  %v2874_v49 = vunpack.i.h.bf16 %v2872_v22  ;;  %v2873_v57 = vunpack.i.l.bf16 %v2872_v22 }
 0xb82   :  { %2816 = vmatpush3.bf16.msra.mxu0 %v2937_v27 }
 0xb83   :  { %2817 = vmatprep.subr.bf16.mxu0 %v2938_v0  ;;  %v2175_v5 = vsel %vm650_vm11, %v3476_v28, %v2873_v57 }
 0xb86   :  { %2818 = vmatpush3.bf16.msra.mxu0 %v2938_v0 }
 0xb91   :  { %v1931_v55 = vpop.xlane.xlu1 %1930 }
 0xb92   :  { %3063 = vrcp.f32 %v1931_v55 }
 0xb93   :  { %3065 = vrcp.f32 %v1928_v54 }
 0xb94   :  { %3067 = vrcp.f32 %v1934_v16 }
 0xb95   :  { %v1925_v19 = vpop.xlane.xlu1 %1924 }
 0xb96   :  { %3069 = vrcp.f32 %v1925_v19 }
 0xb99   :  { %v2017_v31 = vpop.permute.xlu1 %2016 }
 0xb9a   :  { %2807 = vmatprep.subr.bf16.mxu1 %v2017_v31 }
 0xb9b   :  { %2808 = vmatpush3.bf16.msra.mxu1 %v2017_v31 }
 0xb9c   :  { %v3064_v7 = vpop.eup %3063 }
 0xb9d   :  { %v2019_v29 = vpop.permute.xlu1 %2018  ;;  %v3066_v56 = vpop.eup %3065  ;;  %v1949_v61 = vmul.f32 %v3064_v7, %v3052_v52 }
 0xb9e   :  { %2809 = vmatprep.subr.bf16.mxu1 %v2019_v29  ;;  %v3068_v8 = vpop.eup %3067  ;;  %v1948_v24 = vmul.f32 %v3066_v56, %v3785_v58 }
 0xb9f   :  { %2810 = vmatpush3.bf16.msra.mxu1 %v2019_v29  ;;  %v1950_v51 = vmul.f32 %v3068_v8, %v3781_v44 }
 0xba0   :  { %v3070_v25 = vpop.eup %3069 }
 0xba1   :  { %v1947_v1 = vmul.f32 %v3070_v25, %v3054_v18  ;;  %v1954_v20 = vpack.c.bf16 %v1950_v51, %v1949_v61  ;;  %v2867_v40 = vpop.permute.xlu1 %2866 }
 0xba2   :  { %v2869_v14 = vunpack.i.h.bf16 %v2867_v40  ;;  %v2868_v15 = vunpack.i.l.bf16 %v2867_v40 }
 0xba3   :  { %v1953_v53 = vpack.c.bf16 %v1948_v24, %v1947_v1 }
 0xba4   :  { %v2174_v9 = vsel %vm650_vm11, %v3482_v33, %v2869_v14  ;;  %v2173_v54 = vsel %vm650_vm11, %v3478_v30, %v2868_v15  ;;  %v3130_v15 = vmov 1934713408  }
 0xba5   :  { %2811 = vmatprep.mubr.msk.bf16.mxu1 %vm335_vm8, %v1953_v53  ;;  %v2877_v2 = vpop.permute.xlu1 %2876 }
 0xba6   :  { %2812 = vmatmul.mubr.msk.bf16.vlgmr.msra.gmra.mrb[44].mxu1 %vm335_vm8, %v1954_v20  ;;  %v2879_v6 = vunpack.i.h.bf16 %v2877_v2  ;;  %v2878_v12 = vunpack.i.l.bf16 %v2877_v2  ;;  %v3129_v2 = vmov 1983009808  }
 0xba8   :  { %v2181_v42 = vsel %vm67_vm0, %v2173_v54, %v2878_v12  ;;  %v2182_v28 = vsel %vm67_vm0, %v2174_v9, %v2879_v6  ;;  %v2333_v6 = vunpack.c.l.s4 %v3130_v15 }
 0xc54   :  { %v2805_v58 = vpop.f32.mrb[36].mxu0 }
 0xc55   :  { %v2001_v44 = vpop.f32.mrb[37].mxu0 }
 0xc56   :  { %v2806_v4 = vpop.f32.mrb[38].mxu0 }
 0xc57   :  { %v2890_v11 = vpack.i.bf16 %v2806_v4, %v2805_v58  ;;  %v2004_v59 = vpop.f32.mrb[39].mxu0 }
 0xc58   :  { %v2885_v52 = vpack.i.bf16 %v2004_v59, %v2001_v44 }
 0xc59   :  { %2891 = vrot.lane.b32.xlu0 %v2890_v11, %s3128_s13 }
 0xc5a   :  { %2886 = vrot.lane.b32.xlu1 %v2885_v52, %s3128_s13 }
 0xc5d   :  { %2901 = vrot.lane.b32.xlu0 %v2900_v38, %s3126_s28 }
 0xc5e   :  { %2896 = vrot.lane.b32.xlu1 %v2895_v39, %s3126_s28  ;;  %v2882_v39 = vpop.permute.xlu0 %2881 }
 0xc5f   :  { %v2884_v34 = vunpack.i.h.bf16 %v2882_v39 }
 0xc61   :  { %2911 = vrot.lane.b32.xlu0 %v2910_v36, %s3127_s29  ;;  %v2883_v36 = vunpack.i.l.bf16 %v2882_v39 }
 0xc62   :  { %2906 = vrot.lane.b32.xlu1 %v2905_v62, %s3127_s29  ;;  %v2176_v62 = vsel %vm650_vm11, %v3480_v32, %v2874_v49 }
 0xc63   :  { %v2183_v17 = vsel %vm67_vm0, %v2175_v5, %v2883_v36  ;;  %v2184_v26 = vsel %vm67_vm0, %v2176_v62, %v2884_v34  ;;  %v2302_v34 = vunpack.c.l.s4 %v3129_v2  ;;  %v2547_v36 = vld [vmem:[%s3916_s9] ss:$0 sm:$0xff]  ;;  %s3132_s9 = smov [#allocation6]  }
 0xc64   :  { %s2476_s14 = sshll.u32 %s3132_s9, 4  ;;  %s2477_s14 = int_to_ptr.vmem [resolvable:$true] %s2476_s14 }
 0xc65   :  { %v2303_v14 = vunpack.c.0.s8 %v2302_v34  ;;  %s3093_s15 = scalar_lea.vmem %s2477_s14, 544  ;;  %p3098_p9 = scmp.lt.s32.totalorder %s2477_s14, %s2477_s14 }
 0xc66   :  { %p3094_p8 = scmp.ne.s32.totalorder %s2477_s14, %s3093_s15  ;;  %p3099_p10 = scmp.lt.s32.totalorder %s3093_s15, %s3093_s15 }
 0xc67   :  { %v2306_v5 = vsub.s32 %v2303_v14, %v3239_v21 }
 0xc68   :  { %p3100_p11 = por %p3099_p10, %p3098_p9 }
 0xc6a   :  { %p3101_p12 = pnand %p3100_p11, %p3094_p8 }
 0xc79   :  { %v2813_v3 = vpop.f32.mrb[44].mxu1 }
 0xc7a   :  { %v2062_v18 = vpop.f32.mrb[45].mxu1 }
 0xc7b   :  { %v2814_v46 = vpop.f32.mrb[46].mxu1 }
 0xc7c   :  { %v2920_v35 = vpack.i.bf16 %v2814_v46, %v2813_v3  ;;  %v2065_v37 = vpop.f32.mrb[47].mxu1 }
 0xc7d   :  { %v2915_v38 = vpack.i.bf16 %v2065_v37, %v2062_v18 }
 0xc7e   :  { %2921 = vrot.lane.b32.xlu0 %v2920_v35, %s3128_s13 }
 0xc7f   :  { %2916 = vrot.lane.b32.xlu1 %v2915_v38, %s3128_s13 }
 0xccb   :  { %v2892_v13 = vpop.permute.xlu0 %2891 }
 0xccc   :  { %v2894_v45 = vunpack.i.h.bf16 %v2892_v13  ;;  %v2893_v60 = vunpack.i.l.bf16 %v2892_v13  ;;  %v2887_v16 = vpop.permute.xlu1 %2886  ;;  %v2334_v13 = vunpack.c.0.s8 %v2333_v6 }
 0xccd   :  { %v2889_v23 = vunpack.i.h.bf16 %v2887_v16  ;;  %v2888_v32 = vunpack.i.l.bf16 %v2887_v16 }
 0xcce   :  { %v2192_v10 = vsel %vm2189_vm13, %v2183_v17, %v2893_v60  ;;  %v2193_v50 = vsel %vm2189_vm13, %v2184_v26, %v2894_v45  ;;  %v3131_v26 = vmov 0.0  }
 0xccf   :  { %v2199_v63 = vpack.c.bf16 %v2193_v50, %v2192_v10  ;;  %v2191_v55 = vsel %vm2189_vm13, %v2182_v28, %v2889_v23  ;;  %v2190_v19 = vsel %vm2189_vm13, %v2181_v42, %v2888_v32  ;;  %v2902_v30 = vpop.permute.xlu0 %2901  ;;  %v2337_v28 = vsub.s32 %v2334_v13, %v3239_v21 }
 0xcd0   :  { %v2198_v31 = vpack.c.bf16 %v2191_v55, %v2190_v19  ;;  %v2897_v33 = vpop.permute.xlu1 %2896  ;;  %v2904_v29 = vunpack.i.h.bf16 %v2902_v30  ;;  %v2903_v56 = vunpack.i.l.bf16 %v2902_v30 }
 0xcd1   :  { %v2899_v25 = vunpack.i.h.bf16 %v2897_v33  ;;  %v2898_v61 = vunpack.i.l.bf16 %v2897_v33 }
 0xcd2   :  { %2819 = vmatprep.mubr.msk.bf16.mxu0 %vm335_vm8, %v2198_v31  ;;  %v2180_v20 = vsel %vm650_vm11, %v3496_v47, %v2904_v29  ;;  %v2179_v27 = vsel %vm650_vm11, %v3489_v41, %v2903_v56 }
 0xcd3   :  { %2820 = vmatmul.mubr.msk.bf16.vlgmr.msra.gmra.mrb[40].mxu0 %vm335_vm8, %v2199_v63  ;;  %v2912_v7 = vpop.permute.xlu0 %2911  ;;  %v2178_v58 = vsel %vm650_vm11, %v3498_v48, %v2899_v25  ;;  %v2177_v44 = vsel %vm650_vm11, %v3491_v43, %v2898_v61 }
 0xcd4   :  { %v2907_v8 = vpop.permute.xlu1 %2906  ;;  %v2914_v1 = vunpack.i.h.bf16 %v2912_v7  ;;  %v2913_v24 = vunpack.i.l.bf16 %v2912_v7 }
 0xcd5   :  { %v2909_v51 = vunpack.i.h.bf16 %v2907_v8  ;;  %v2908_v53 = vunpack.i.l.bf16 %v2907_v8 }
 0xcd6   :  { %v2187_v52 = vsel %vm67_vm0, %v2179_v27, %v2913_v24  ;;  %v2188_v3 = vsel %vm67_vm0, %v2180_v20, %v2914_v1 }
 0xcd7   :  { %v2185_v47 = vsel %vm67_vm0, %v2177_v44, %v2908_v53  ;;  %v2186_v41 = vsel %vm67_vm0, %v2178_v58, %v2909_v51 }
 0xcf0   :  { %v2922_v0 = vpop.permute.xlu0 %2921 }
 0xcf1   :  { %v2924_v4 = vunpack.i.h.bf16 %v2922_v0  ;;  %v2923_v11 = vunpack.i.l.bf16 %v2922_v0  ;;  %v2917_v59 = vpop.permute.xlu1 %2916 }
 0xcf2   :  { %v2919_v18 = vunpack.i.h.bf16 %v2917_v59  ;;  %v2918_v46 = vunpack.i.l.bf16 %v2917_v59 }
 0xcf3   :  { %v2196_v35 = vsel %vm2189_vm13, %v2187_v52, %v2923_v11  ;;  %v2197_v48 = vsel %vm2189_vm13, %v2188_v3, %v2924_v4 }
 0xcf4   :  { %v2201_v37 = vpack.c.bf16 %v2197_v48, %v2196_v35  ;;  %v2194_v43 = vsel %vm2189_vm13, %v2185_v47, %v2918_v46  ;;  %v2195_v38 = vsel %vm2189_vm13, %v2186_v41, %v2919_v18 }
 0xcf5   :  { %v2200_v22 = vpack.c.bf16 %v2195_v38, %v2194_v43 }
 0xcf7   :  { %2823 = vmatprep.mubr.msk.bf16.mxu0 %vm335_vm8, %v2200_v22 }
 0xcf8   :  { %2824 = vmatmul.mubr.msk.bf16.gmra.mrb[44].mxu0 %vm335_vm8, %v2201_v37 }
 0xda6   :  { %v2821_v40 = vpop.f32.mrb[40].mxu0 }
 0xda7   :  { %v2271_v39 = vpop.f32.mrb[41].mxu0  ;;  %v2280_v62 = vadd.f32 %v2821_v40, %v2547_v36 }
 0xda8   :  { %v2822_v49 = vpop.f32.mrb[42].mxu0  ;;  %v2272_v12 = vadd.f32 %v2547_v36, %v2271_v39 }
 0xda9   :  { %v2274_v57 = vpop.f32.mrb[43].mxu0  ;;  %v2438_v32 = vrot.slane %v2280_v62, %v2306_v5 }
 0xdaa   :  { %v2300_v45 = vcombine.high %v2272_v12, %v3131_v26  ;;  %v2275_v60 = vadd.f32 %v2547_v36, %v2274_v57  ;;  %v2307_v50 = vrot.slane %v2272_v12, %v2306_v5 }
 0xdac   :  { %v2314_v31 = vrot.slane %v2300_v45, %v2306_v5  ;;  %v2366_v30 = vcombine.high %v2275_v60, %v3131_v26  ;;  %v2373_v25 = vrot.slane %v2275_v60, %v2306_v5 }
 0xdae   :  { %v2380_v53 = vrot.slane %v2366_v30, %v2306_v5 }
 0xdcb   :  { %v2825_v17 = vpop.f32.mrb[44].mxu0 }
 0xdcc   :  { %v2295_v16 = vadd.f32 %v2825_v17, %v2547_v36  ;;  %v2286_v9 = vpop.f32.mrb[45].mxu0 }
 0xdcd   :  { %v2287_v54 = vadd.f32 %v2547_v36, %v2286_v9  ;;  %v2826_v23 = vpop.f32.mrb[46].mxu0 }
 0xdce   :  { %v2445_v42 = vrot.slane %v2295_v16, %v2306_v5  ;;  %v2289_v10 = vpop.f32.mrb[47].mxu0 }
 0xdcf   :  { %v2315_v63 = vcombine.high %v2287_v54, %v3131_v26  ;;  %v2322_v55 = vrot.slane %v2287_v54, %v2306_v5  ;;  %v2290_v19 = vadd.f32 %v2547_v36, %v2289_v10 }
 0xdd0   :  { %v2446_v33 = vcombine.low %v2438_v32, %v2445_v42 }
 0xdd1   :  { %v2329_v7 = vrot.slane %v2315_v63, %v2306_v5  ;;  %v2330_v29 = vcombine.low %v2307_v50, %v2322_v55  ;;  %v2331_v56 = vcombine.high %v2307_v50, %v2322_v55  ;;  %v2381_v8 = vcombine.high %v2290_v19, %v3131_v26 }
 0xdd2   :  { %2562 = vst.sshfl [vmem:[#allocation6 + $0x20] sm:$0x11 pattern:$0x73516240] %v2446_v33  ;;  %v2388_v61 = vrot.slane %v2290_v19, %v2306_v5 }
 0xdd3   :  { %v2338_v1 = vrot.slane %v2330_v29, %v2337_v28  ;;  %v2345_v21 = vrot.slane %v2331_v56, %v2337_v28  ;;  %v2346_v24 = vcombine.low %v2314_v31, %v2329_v7  ;;  %v2347_v51 = vcombine.high %v2314_v31, %v2329_v7  ;;  %2554 = vst.sshfl [vmem:[#allocation6] sm:$0x11 pattern:$0x73516240] %v2330_v29 }
 0xdd4   :  { %2555 = vst.sshfl [vmem:[#allocation6 + $0x4] sm:$0x11 pattern:$0x73516240] %v2331_v56  ;;  %v2395_v20 = vrot.slane %v2381_v8, %v2306_v5  ;;  %v2396_v27 = vcombine.low %v2373_v25, %v2388_v61  ;;  %v2397_v0 = vcombine.high %v2373_v25, %v2388_v61 }
 0xdd5   :  { %v2354_v58 = vrot.slane %v2346_v24, %v2337_v28  ;;  %v2361_v44 = vrot.slane %v2347_v51, %v2337_v28  ;;  %v2362_v4 = vcombine.high %v2338_v1, %v3131_v26  ;;  %v2363_v11 = vcombine.high %v2345_v21, %v3131_v26  ;;  %2556 = vst.sshfl [vmem:[#allocation6 + $0x8] sm:$0x11 pattern:$0x73516240] %v2346_v24 }
 0xdd6   :  { %2557 = vst.sshfl [vmem:[#allocation6 + $0xc] sm:$0x11 pattern:$0x73516240] %v2347_v51  ;;  %v2404_v59 = vrot.slane %v2396_v27, %v2337_v28  ;;  %v2411_v52 = vrot.slane %v2397_v0, %v2337_v28  ;;  %v2412_v3 = vcombine.low %v2380_v53, %v2395_v20  ;;  %v2413_v18 = vcombine.high %v2380_v53, %v2395_v20 }
 0xdd7   :  { %2558 = vst.sshfl [vmem:[#allocation6 + $0x10] sm:$0x11 pattern:$0x73516240] %v2396_v27  ;;  %v2364_v46 = vcombine.high %v2354_v58, %v3131_v26  ;;  %v2365_v47 = vcombine.high %v2361_v44, %v3131_v26  ;;  %2455 = vst [vmem:[#allocation6 + $0x2] sm:$0x3] %v2362_v4 }
 0xdd8   :  { %2559 = vst.sshfl [vmem:[#allocation6 + $0x14] sm:$0x11 pattern:$0x73516240] %v2397_v0  ;;  %2457 = vst [vmem:[#allocation6 + $0x6] sm:$0x3] %v2363_v11  ;;  %v2420_v41 = vrot.slane %v2412_v3, %v2337_v28  ;;  %v2427_v35 = vrot.slane %v2413_v18, %v2337_v28  ;;  %v2428_v48 = vcombine.high %v2404_v59, %v3131_v26 }
 0xdd9   :  { %v2429_v37 = vcombine.high %v2411_v52, %v3131_v26  ;;  %2560 = vst.sshfl [vmem:[#allocation6 + $0x18] sm:$0x11 pattern:$0x73516240] %v2412_v3  ;;  %2459 = vst [vmem:[#allocation6 + $0xa] sm:$0x3] %v2364_v46 }
 0xdda   :  { %2561 = vst.sshfl [vmem:[#allocation6 + $0x1c] sm:$0x11 pattern:$0x73516240] %v2413_v18  ;;  %2461 = vst [vmem:[#allocation6 + $0xe] sm:$0x3] %v2365_v47  ;;  %v2430_v43 = vcombine.high %v2420_v41, %v3131_v26  ;;  %v2431_v38 = vcombine.high %v2427_v35, %v3131_v26 }
 0xddb   :  { %2463 = vst [vmem:[#allocation6 + $0x12] sm:$0x3] %v2428_v48  ;;  %2465 = vst [vmem:[#allocation6 + $0x16] sm:$0x3] %v2429_v37 }
 0xddc   :  { %2467 = vst [vmem:[#allocation6 + $0x1a] sm:$0x3] %v2430_v43  ;;  %2469 = vst [vmem:[#allocation6 + $0x1e] sm:$0x3] %v2431_v38 }
 0xddd   :  { %3104 = shalt.err (!%p3101_p12)
}
 0xdde   :  { %s3105_s18 = scalar_lea.hbm %s3917_s10, 544 }
 0xddf   :  { %p3106_p13 = scmp.ne.s32.totalorder %s3917_s10, %s3105_s18  ;;  %p3109_p0 = scmp.lt.u32.totalorder %s3105_s18, %s3917_s10 }
 0xde1   :  { %p3111_p1 = pnand %p3109_p0, %p3106_p13 }
 0xde3   :  { %3114 = shalt.err (!%p3111_p1)
}
 0xde4   :  { %s3133_s22 = smov 32   ;;  %s3134_s23 = smov 2  }
 0xde5   :  { %2482 = dma.vmem_to_hbm [thread:$0]  %s2477_s14, 544, %s3917_s10, [#allocation5], %s3133_s22, %s3133_s22, %s3134_s23  }
 0xde6   :  { %3117 = dma.done.wait [#allocation5], 544  }
 0xde7   :  { %3118 = vsyncadd [#allocation5], 4294966752 }
 0xde8   :  { %2486 = vsyncpa [#allocation4], 1 }
 0xde9   :  { %2487 = vsyncpa [#allocation5], 1 }

</bundles_post_ra>
